<compile_context>
chip_gen: v5e
topology: v5e:2x2
jax: 0.10.0
libtpu: 0.0.40
codegen_flags: <defaults>
</compile_context>

<pallas_src>
import functools

import jax
import jax.numpy as jnp
from jax.experimental import pallas as pl
from jax.experimental.pallas import tpu as pltpu


def _seq2seq_kernel(x2d_ref, wih1_ref, whh1_ref, b1_ref, whh2_ref, b2_ref,
                    y_ref):
    """Fused encoder+decoder LSTM. Single grid step; loops unrolled in-kernel.

    x2d_ref : (T_in*B, I)   time-major rows (row t*B + b == x[b, t, :]), f32
    wih1_ref: (I, 4H)       encoder W_ih^T, bf16
    whh1_ref: (H, 4H)       encoder W_hh^T, bf16
    b1_ref  : (1, 4H)       encoder b_ih + b_hh, f32
    whh2_ref: (H, 4H)       decoder W_hh^T, bf16
    b2_ref  : (1, 4H)       decoder b_ih + b_hh, f32
    y_ref   : (B, T_out*H)  decoder hidden states, lane-dense, single store
    """
    B, TH = y_ref.shape
    fourH = whh1_ref.shape[1]
    H = fourH // 4
    T_out = TH // H
    T_in = x2d_ref.shape[0] // B

    # --- Hoisted encoder input projection: one bulk bf16 MXU push, f32 acc ----
    x_bf = x2d_ref[...].astype(jnp.bfloat16)
    xw = (jnp.dot(x_bf, wih1_ref[...], preferred_element_type=jnp.float32)
          + b1_ref[...])                                    # (T_in*B, 4H) f32

    # Loop-invariant loads hoisted once.
    whh1 = whh1_ref[...]        # (H, 4H) bf16
    whh2 = whh2_ref[...]        # (H, 4H) bf16
    b2 = b2_ref[...]            # (1, 4H) f32

    def cell(gates, c_prev):
        # Full-width (B, 4H) EUP passes, then cheap static lane slices
        # (4H = 128 exactly fills the lane dim -> already the right layout).
        sig = jax.nn.sigmoid(gates)
        th = jnp.tanh(gates)
        i_g = sig[:, 0 * H:1 * H]
        f_g = sig[:, 1 * H:2 * H]
        g_g = th[:, 2 * H:3 * H]
        o_g = sig[:, 3 * H:4 * H]
        c_new = f_g * c_prev + i_g * g_g
        h_new = o_g * jnp.tanh(c_new)
        return h_new, c_new

    h = jnp.zeros((B, H), jnp.float32)
    c = jnp.zeros((B, H), jnp.float32)

    # --- Encoder: only h @ W_hh1^T (bf16 MXU, f32 acc) is on the serial path --
    # TODO(synk): on v7x, matmul_push_rhs(whh1)/matmul_acc_lhs/matmul_pop with
    # MRB accumulate would keep the RHS resident and fold the xw_t add into
    # the pop; kept portable jnp.dot here.
    for t in range(T_in):
        gates = xw[t * B:(t + 1) * B, :] + jnp.dot(
            h.astype(jnp.bfloat16), whh1, preferred_element_type=jnp.float32)
        h, c = cell(gates, c)

    # --- Decoder: zero input => skip x @ W_ih2^T entirely ---------------------
    hs = []
    for t in range(T_out):
        gates = jnp.dot(h.astype(jnp.bfloat16), whh2,
                        preferred_element_type=jnp.float32) + b2
        h, c = cell(gates, c)
        hs.append(h)

    # Single lane-dense store (last dim = T_out*H = 256, multiple of 128)
    # instead of T_out masked 32-lane per-step stores.
    y_ref[...] = jnp.concatenate(hs, axis=1).astype(y_ref.dtype)


def seq2seq_pallas(x2d, wih1_t, whh1_t, b1, whh2_t, b2, *, batch, t_out):
    """Single fused pallas_call. Returns y as (B, T_out*H), lane-dense."""
    TB, I = x2d.shape
    H = whh1_t.shape[0]

    grid_spec = pltpu.PrefetchScalarGridSpec(
        num_scalar_prefetch=0,
        grid=(1,),
        in_specs=[
            pl.BlockSpec((TB, I), lambda i: (0, 0)),          # x (bulk)
            pl.BlockSpec((I, 4 * H), lambda i: (0, 0)),       # W_ih1^T (bf16)
            pl.BlockSpec((H, 4 * H), lambda i: (0, 0)),       # W_hh1^T (bf16)
            pl.BlockSpec((1, 4 * H), lambda i: (0, 0)),       # bias1
            pl.BlockSpec((H, 4 * H), lambda i: (0, 0)),       # W_hh2^T (bf16)
            pl.BlockSpec((1, 4 * H), lambda i: (0, 0)),       # bias2
        ],
        out_specs=pl.BlockSpec((batch, t_out * H), lambda i: (0, 0)),
    )

    return pl.pallas_call(
        _seq2seq_kernel,
        grid_spec=grid_spec,
        out_shape=jax.ShapeDtypeStruct((batch, t_out * H), jnp.float32),
        compiler_params=pltpu.CompilerParams(
            dimension_semantics=("arbitrary",)),   # strictly sequential recurrence
    )(x2d, wih1_t, whh1_t, b1, whh2_t, b2)


def init_params(key, input_size, hidden_size):
    """Deterministic synthetic params mirroring nn.LSTM parameter shapes."""
    k = jax.random.split(key, 8)
    s = 1.0 / jnp.sqrt(hidden_size)
    u = lambda kk, shape: jax.random.uniform(kk, shape, jnp.float32, -s, s)
    return {
        # seq1: LSTM(input_size -> hidden_size)
        "w_ih1": u(k[0], (4 * hidden_size, input_size)),
        "w_hh1": u(k[1], (4 * hidden_size, hidden_size)),
        "b_ih1": u(k[2], (4 * hidden_size,)),
        "b_hh1": u(k[3], (4 * hidden_size,)),
        # seq2: LSTM(hidden_size -> hidden_size)  (w_ih2 unused: decoder input is 0)
        "w_ih2": u(k[4], (4 * hidden_size, hidden_size)),
        "w_hh2": u(k[5], (4 * hidden_size, hidden_size)),
        "b_ih2": u(k[6], (4 * hidden_size,)),
        "b_hh2": u(k[7], (4 * hidden_size,)),
    }


@functools.partial(jax.jit, static_argnames=("output_shape",))
def seq2seq_forward(x, params, output_shape):
    """x: (B, T_in, input_size) batch-first, like the PyTorch module."""
    B, T_in, I = x.shape
    T_out, H = output_shape

    # One small layout op (module API is batch-first) giving time-major rows
    # so the per-step xw slice is contiguous; post-kernel transpose is gone.
    x2d = jnp.transpose(x, (1, 0, 2)).reshape(T_in * B, I)

    # bf16 MXU operands, cast once here; biases stay f32 (added post-acc).
    wih1_t = params["w_ih1"].T.astype(jnp.bfloat16)               # (I, 4H)
    whh1_t = params["w_hh1"].T.astype(jnp.bfloat16)               # (H, 4H)
    b1 = (params["b_ih1"] + params["b_hh1"])[None, :]             # (1, 4H) f32
    whh2_t = params["w_hh2"].T.astype(jnp.bfloat16)               # (H, 4H)
    b2 = (params["b_ih2"] + params["b_hh2"])[None, :]             # (1, 4H) f32

    y = seq2seq_pallas(x2d, wih1_t, whh1_t, b1, whh2_t, b2,
                       batch=B, t_out=T_out)                      # (B, T_out*H)
    return y.reshape(B, T_out, H)   # free contiguous reshape, no transpose


# ---------------------------- pure-JAX references -----------------------------
def _lstm_ref(x_tm, w_ih, w_hh, b_ih, b_hh, h0, c0, mxu_dtype=None):
    """If mxu_dtype is set, matmul operands are rounded to it (f32 accumulate),
    mirroring the kernel's bf16 MXU feed."""
    H = h0.shape[1]

    def cast(a):
        return a if mxu_dtype is None else a.astype(mxu_dtype).astype(jnp.float32)

    w_ih_t = cast(w_ih.T)
    w_hh_t = cast(w_hh.T)

    def step(carry, x_t):
        h, c = carry
        g = cast(x_t) @ w_ih_t + cast(h) @ w_hh_t + b_ih + b_hh
        i = jax.nn.sigmoid(g[:, :H])
        f = jax.nn.sigmoid(g[:, H:2 * H])
        gg = jnp.tanh(g[:, 2 * H:3 * H])
        o = jax.nn.sigmoid(g[:, 3 * H:])
        c = f * c + i * gg
        h = o * jnp.tanh(c)
        return (h, c), h

    (h_n, c_n), ys = jax.lax.scan(step, (h0, c0), x_tm)
    return ys, h_n, c_n


def seq2seq_ref(x, params, output_shape, mxu_dtype=None):
    B = x.shape[0]
    T_out, H = output_shape
    x_tm = jnp.transpose(x, (1, 0, 2))
    h0 = jnp.zeros((B, H), jnp.float32)
    c0 = jnp.zeros((B, H), jnp.float32)
    _, h_n, c_n = _lstm_ref(x_tm, params["w_ih1"], params["w_hh1"],
                            params["b_ih1"], params["b_hh1"], h0, c0, mxu_dtype)
    z_tm = jnp.zeros((T_out, B, H), jnp.float32)
    y_tm, _, _ = _lstm_ref(z_tm, params["w_ih2"], params["w_hh2"],
                           params["b_ih2"], params["b_hh2"], h_n, c_n, mxu_dtype)
    return jnp.transpose(y_tm, (1, 0, 2))


if __name__ == "__main__":
    # Module config: input_shape = (T_in, input_size), output_shape = (T_out, hidden)
    input_shape = (8, 16)
    output_shape = (8, 32)
    batch = 2

    key = jax.random.PRNGKey(0)
    k_x, k_p = jax.random.split(key)
    x = jax.random.normal(k_x, (batch, input_shape[0], input_shape[1]), jnp.float32)
    params = init_params(k_p, input_shape[1], output_shape[1])

    y = jax.block_until_ready(seq2seq_forward(x, params, output_shape))
    assert y.shape == (batch, output_shape[0], output_shape[1])

    # Algorithmic check: reference with the same bf16 operand rounding.
    y_bf_ref = seq2seq_ref(x, params, output_shape, mxu_dtype=jnp.bfloat16)
    assert jnp.allclose(y, y_bf_ref, atol=5e-3, rtol=1e-3), \
        "mismatch vs bf16-operand JAX reference"

    # Approximation check vs full-f32 module math (bf16 MXU feed loosens tol).
    y_f32_ref = seq2seq_ref(x, params, output_shape)
    assert jnp.allclose(y, y_f32_ref, atol=5e-2, rtol=1e-2), \
        "mismatch vs f32 JAX reference"

    print("KERNEL_OK")
</pallas_src>

<mosaic_0001>
module attributes {stable_mosaic.version = 11 : i64} {
  func.func @_seq2seq_kernel(%arg0: i32, %arg1: memref<16x16xf32, #tpu.memory_space<vmem>>, %arg2: memref<16x128xbf16, #tpu.memory_space<vmem>>, %arg3: memref<32x128xbf16, #tpu.memory_space<vmem>>, %arg4: memref<1x128xf32, #tpu.memory_space<vmem>>, %arg5: memref<32x128xbf16, #tpu.memory_space<vmem>>, %arg6: memref<1x128xf32, #tpu.memory_space<vmem>>, %arg7: memref<2x256xf32, #tpu.memory_space<vmem>>) attributes {dimension_semantics = [#tpu.dimension_semantics<arbitrary>], iteration_bounds = array<i64: 1>, scalar_prefetch = 0 : i64, scratch_operands = 0 : i64, tpu.core_type = #tpu.core_type<tc>, window_params = [{pipeline_mode = #tpu.pipeline_mode<synchronous>, transform_indices = @transform_0, window_bounds = array<i64: 16, 16>}, {pipeline_mode = #tpu.pipeline_mode<synchronous>, transform_indices = @transform_1, window_bounds = array<i64: 16, 128>}, {pipeline_mode = #tpu.pipeline_mode<synchronous>, transform_indices = @transform_2, window_bounds = array<i64: 32, 128>}, {pipeline_mode = #tpu.pipeline_mode<synchronous>, transform_indices = @transform_3, window_bounds = array<i64: 1, 128>}, {pipeline_mode = #tpu.pipeline_mode<synchronous>, transform_indices = @transform_4, window_bounds = array<i64: 32, 128>}, {pipeline_mode = #tpu.pipeline_mode<synchronous>, transform_indices = @transform_5, window_bounds = array<i64: 1, 128>}, {pipeline_mode = #tpu.pipeline_mode<synchronous>, transform_indices = @transform_6, window_bounds = array<i64: 2, 256>}]} {
    %c0 = arith.constant 0 : index
    %c0_0 = arith.constant 0 : index
    %0 = vector.load %arg1[%c0, %c0_0] : memref<16x16xf32, #tpu.memory_space<vmem>>, vector<16x16xf32>
    %1 = arith.truncf %0 : vector<16x16xf32> to vector<16x16xbf16>
    %c0_1 = arith.constant 0 : index
    %c0_2 = arith.constant 0 : index
    %2 = vector.load %arg2[%c0_1, %c0_2] : memref<16x128xbf16, #tpu.memory_space<vmem>>, vector<16x128xbf16>
    %cst = arith.constant dense<0.000000e+00> : vector<16x128xf32>
    %3 = tpu.matmul %1, %2, %cst {dimension_numbers = #tpu.dot_dimension_numbers<[1], [0], [0], [1], [0, 0, 1, 1], [], []>} : vector<16x16xbf16>, vector<16x128xbf16>, vector<16x128xf32> -> vector<16x128xf32>
    %c0_3 = arith.constant 0 : index
    %c0_4 = arith.constant 0 : index
    %4 = vector.load %arg4[%c0_3, %c0_4] : memref<1x128xf32, #tpu.memory_space<vmem>>, vector<1x128xf32>
    %5 = vector.broadcast %4 : vector<1x128xf32> to vector<16x128xf32>
    %6 = arith.addf %3, %5 : vector<16x128xf32>
    %c0_5 = arith.constant 0 : index
    %c0_6 = arith.constant 0 : index
    %7 = vector.load %arg3[%c0_5, %c0_6] : memref<32x128xbf16, #tpu.memory_space<vmem>>, vector<32x128xbf16>
    %c0_7 = arith.constant 0 : index
    %c0_8 = arith.constant 0 : index
    %8 = vector.load %arg5[%c0_7, %c0_8] : memref<32x128xbf16, #tpu.memory_space<vmem>>, vector<32x128xbf16>
    %c0_9 = arith.constant 0 : index
    %c0_10 = arith.constant 0 : index
    %9 = vector.load %arg6[%c0_9, %c0_10] : memref<1x128xf32, #tpu.memory_space<vmem>>, vector<1x128xf32>
    %cst_11 = arith.constant 0.000000e+00 : f32
    %10 = vector.broadcast %cst_11 : f32 to vector<2x32xf32>
    %cst_12 = arith.constant 0.000000e+00 : f32
    %11 = vector.broadcast %cst_12 : f32 to vector<2x32xf32>
    %12 = vector.extract_strided_slice %6 {offsets = [0, 0], sizes = [2, 128], strides = [1, 1]} : vector<16x128xf32> to vector<2x128xf32>
    %13 = arith.truncf %10 : vector<2x32xf32> to vector<2x32xbf16>
    %cst_13 = arith.constant dense<0.000000e+00> : vector<2x128xf32>
    %14 = tpu.matmul %13, %7, %cst_13 {dimension_numbers = #tpu.dot_dimension_numbers<[1], [0], [0], [1], [0, 0, 1, 1], [], []>} : vector<2x32xbf16>, vector<32x128xbf16>, vector<2x128xf32> -> vector<2x128xf32>
    %15 = arith.addf %12, %14 : vector<2x128xf32>
    %16 = arith.negf %15 : vector<2x128xf32>
    %17 = math.exp %16 : vector<2x128xf32>
    %cst_14 = arith.constant 1.000000e+00 : f32
    %18 = vector.broadcast %cst_14 : f32 to vector<2x128xf32>
    %19 = arith.addf %18, %17 : vector<2x128xf32>
    %20 = arith.divf %18, %19 : vector<2x128xf32>
    %21 = math.tanh %15 : vector<2x128xf32>
    %22 = vector.extract_strided_slice %20 {offsets = [0, 0], sizes = [2, 32], strides = [1, 1]} : vector<2x128xf32> to vector<2x32xf32>
    %23 = vector.extract_strided_slice %20 {offsets = [0, 32], sizes = [2, 32], strides = [1, 1]} : vector<2x128xf32> to vector<2x32xf32>
    %24 = vector.extract_strided_slice %21 {offsets = [0, 64], sizes = [2, 32], strides = [1, 1]} : vector<2x128xf32> to vector<2x32xf32>
    %25 = vector.extract_strided_slice %20 {offsets = [0, 96], sizes = [2, 32], strides = [1, 1]} : vector<2x128xf32> to vector<2x32xf32>
    %26 = arith.mulf %23, %11 : vector<2x32xf32>
    %27 = arith.mulf %22, %24 : vector<2x32xf32>
    %28 = arith.addf %26, %27 : vector<2x32xf32>
    %29 = math.tanh %28 : vector<2x32xf32>
    %30 = arith.mulf %25, %29 : vector<2x32xf32>
    %31 = vector.extract_strided_slice %6 {offsets = [2, 0], sizes = [2, 128], strides = [1, 1]} : vector<16x128xf32> to vector<2x128xf32>
    %32 = arith.truncf %30 : vector<2x32xf32> to vector<2x32xbf16>
    %cst_15 = arith.constant dense<0.000000e+00> : vector<2x128xf32>
    %33 = tpu.matmul %32, %7, %cst_15 {dimension_numbers = #tpu.dot_dimension_numbers<[1], [0], [0], [1], [0, 0, 1, 1], [], []>} : vector<2x32xbf16>, vector<32x128xbf16>, vector<2x128xf32> -> vector<2x128xf32>
    %34 = arith.addf %31, %33 : vector<2x128xf32>
    %35 = arith.negf %34 : vector<2x128xf32>
    %36 = math.exp %35 : vector<2x128xf32>
    %cst_16 = arith.constant 1.000000e+00 : f32
    %37 = vector.broadcast %cst_16 : f32 to vector<2x128xf32>
    %38 = arith.addf %37, %36 : vector<2x128xf32>
    %39 = arith.divf %37, %38 : vector<2x128xf32>
    %40 = math.tanh %34 : vector<2x128xf32>
    %41 = vector.extract_strided_slice %39 {offsets = [0, 0], sizes = [2, 32], strides = [1, 1]} : vector<2x128xf32> to vector<2x32xf32>
    %42 = vector.extract_strided_slice %39 {offsets = [0, 32], sizes = [2, 32], strides = [1, 1]} : vector<2x128xf32> to vector<2x32xf32>
    %43 = vector.extract_strided_slice %40 {offsets = [0, 64], sizes = [2, 32], strides = [1, 1]} : vector<2x128xf32> to vector<2x32xf32>
    %44 = vector.extract_strided_slice %39 {offsets = [0, 96], sizes = [2, 32], strides = [1, 1]} : vector<2x128xf32> to vector<2x32xf32>
    %45 = arith.mulf %42, %28 : vector<2x32xf32>
    %46 = arith.mulf %41, %43 : vector<2x32xf32>
    %47 = arith.addf %45, %46 : vector<2x32xf32>
    %48 = math.tanh %47 : vector<2x32xf32>
    %49 = arith.mulf %44, %48 : vector<2x32xf32>
    %50 = vector.extract_strided_slice %6 {offsets = [4, 0], sizes = [2, 128], strides = [1, 1]} : vector<16x128xf32> to vector<2x128xf32>
    %51 = arith.truncf %49 : vector<2x32xf32> to vector<2x32xbf16>
    %cst_17 = arith.constant dense<0.000000e+00> : vector<2x128xf32>
    %52 = tpu.matmul %51, %7, %cst_17 {dimension_numbers = #tpu.dot_dimension_numbers<[1], [0], [0], [1], [0, 0, 1, 1], [], []>} : vector<2x32xbf16>, vector<32x128xbf16>, vector<2x128xf32> -> vector<2x128xf32>
    %53 = arith.addf %50, %52 : vector<2x128xf32>
    %54 = arith.negf %53 : vector<2x128xf32>
    %55 = math.exp %54 : vector<2x128xf32>
    %cst_18 = arith.constant 1.000000e+00 : f32
    %56 = vector.broadcast %cst_18 : f32 to vector<2x128xf32>
    %57 = arith.addf %56, %55 : vector<2x128xf32>
    %58 = arith.divf %56, %57 : vector<2x128xf32>
    %59 = math.tanh %53 : vector<2x128xf32>
    %60 = vector.extract_strided_slice %58 {offsets = [0, 0], sizes = [2, 32], strides = [1, 1]} : vector<2x128xf32> to vector<2x32xf32>
    %61 = vector.extract_strided_slice %58 {offsets = [0, 32], sizes = [2, 32], strides = [1, 1]} : vector<2x128xf32> to vector<2x32xf32>
    %62 = vector.extract_strided_slice %59 {offsets = [0, 64], sizes = [2, 32], strides = [1, 1]} : vector<2x128xf32> to vector<2x32xf32>
    %63 = vector.extract_strided_slice %58 {offsets = [0, 96], sizes = [2, 32], strides = [1, 1]} : vector<2x128xf32> to vector<2x32xf32>
    %64 = arith.mulf %61, %47 : vector<2x32xf32>
    %65 = arith.mulf %60, %62 : vector<2x32xf32>
    %66 = arith.addf %64, %65 : vector<2x32xf32>
    %67 = math.tanh %66 : vector<2x32xf32>
    %68 = arith.mulf %63, %67 : vector<2x32xf32>
    %69 = vector.extract_strided_slice %6 {offsets = [6, 0], sizes = [2, 128], strides = [1, 1]} : vector<16x128xf32> to vector<2x128xf32>
    %70 = arith.truncf %68 : vector<2x32xf32> to vector<2x32xbf16>
    %cst_19 = arith.constant dense<0.000000e+00> : vector<2x128xf32>
    %71 = tpu.matmul %70, %7, %cst_19 {dimension_numbers = #tpu.dot_dimension_numbers<[1], [0], [0], [1], [0, 0, 1, 1], [], []>} : vector<2x32xbf16>, vector<32x128xbf16>, vector<2x128xf32> -> vector<2x128xf32>
    %72 = arith.addf %69, %71 : vector<2x128xf32>
    %73 = arith.negf %72 : vector<2x128xf32>
    %74 = math.exp %73 : vector<2x128xf32>
    %cst_20 = arith.constant 1.000000e+00 : f32
    %75 = vector.broadcast %cst_20 : f32 to vector<2x128xf32>
    %76 = arith.addf %75, %74 : vector<2x128xf32>
    %77 = arith.divf %75, %76 : vector<2x128xf32>
    %78 = math.tanh %72 : vector<2x128xf32>
    %79 = vector.extract_strided_slice %77 {offsets = [0, 0], sizes = [2, 32], strides = [1, 1]} : vector<2x128xf32> to vector<2x32xf32>
    %80 = vector.extract_strided_slice %77 {offsets = [0, 32], sizes = [2, 32], strides = [1, 1]} : vector<2x128xf32> to vector<2x32xf32>
    %81 = vector.extract_strided_slice %78 {offsets = [0, 64], sizes = [2, 32], strides = [1, 1]} : vector<2x128xf32> to vector<2x32xf32>
    %82 = vector.extract_strided_slice %77 {offsets = [0, 96], sizes = [2, 32], strides = [1, 1]} : vector<2x128xf32> to vector<2x32xf32>
    %83 = arith.mulf %80, %66 : vector<2x32xf32>
    %84 = arith.mulf %79, %81 : vector<2x32xf32>
    %85 = arith.addf %83, %84 : vector<2x32xf32>
    %86 = math.tanh %85 : vector<2x32xf32>
    %87 = arith.mulf %82, %86 : vector<2x32xf32>
    %88 = vector.extract_strided_slice %6 {offsets = [8, 0], sizes = [2, 128], strides = [1, 1]} : vector<16x128xf32> to vector<2x128xf32>
    %89 = arith.truncf %87 : vector<2x32xf32> to vector<2x32xbf16>
    %cst_21 = arith.constant dense<0.000000e+00> : vector<2x128xf32>
    %90 = tpu.matmul %89, %7, %cst_21 {dimension_numbers = #tpu.dot_dimension_numbers<[1], [0], [0], [1], [0, 0, 1, 1], [], []>} : vector<2x32xbf16>, vector<32x128xbf16>, vector<2x128xf32> -> vector<2x128xf32>
    %91 = arith.addf %88, %90 : vector<2x128xf32>
    %92 = arith.negf %91 : vector<2x128xf32>
    %93 = math.exp %92 : vector<2x128xf32>
    %cst_22 = arith.constant 1.000000e+00 : f32
    %94 = vector.broadcast %cst_22 : f32 to vector<2x128xf32>
    %95 = arith.addf %94, %93 : vector<2x128xf32>
    %96 = arith.divf %94, %95 : vector<2x128xf32>
    %97 = math.tanh %91 : vector<2x128xf32>
    %98 = vector.extract_strided_slice %96 {offsets = [0, 0], sizes = [2, 32], strides = [1, 1]} : vector<2x128xf32> to vector<2x32xf32>
    %99 = vector.extract_strided_slice %96 {offsets = [0, 32], sizes = [2, 32], strides = [1, 1]} : vector<2x128xf32> to vector<2x32xf32>
    %100 = vector.extract_strided_slice %97 {offsets = [0, 64], sizes = [2, 32], strides = [1, 1]} : vector<2x128xf32> to vector<2x32xf32>
    %101 = vector.extract_strided_slice %96 {offsets = [0, 96], sizes = [2, 32], strides = [1, 1]} : vector<2x128xf32> to vector<2x32xf32>
    %102 = arith.mulf %99, %85 : vector<2x32xf32>
    %103 = arith.mulf %98, %100 : vector<2x32xf32>
    %104 = arith.addf %102, %103 : vector<2x32xf32>
    %105 = math.tanh %104 : vector<2x32xf32>
    %106 = arith.mulf %101, %105 : vector<2x32xf32>
    %107 = vector.extract_strided_slice %6 {offsets = [10, 0], sizes = [2, 128], strides = [1, 1]} : vector<16x128xf32> to vector<2x128xf32>
    %108 = arith.truncf %106 : vector<2x32xf32> to vector<2x32xbf16>
    %cst_23 = arith.constant dense<0.000000e+00> : vector<2x128xf32>
    %109 = tpu.matmul %108, %7, %cst_23 {dimension_numbers = #tpu.dot_dimension_numbers<[1], [0], [0], [1], [0, 0, 1, 1], [], []>} : vector<2x32xbf16>, vector<32x128xbf16>, vector<2x128xf32> -> vector<2x128xf32>
    %110 = arith.addf %107, %109 : vector<2x128xf32>
    %111 = arith.negf %110 : vector<2x128xf32>
    %112 = math.exp %111 : vector<2x128xf32>
    %cst_24 = arith.constant 1.000000e+00 : f32
    %113 = vector.broadcast %cst_24 : f32 to vector<2x128xf32>
    %114 = arith.addf %113, %112 : vector<2x128xf32>
    %115 = arith.divf %113, %114 : vector<2x128xf32>
    %116 = math.tanh %110 : vector<2x128xf32>
    %117 = vector.extract_strided_slice %115 {offsets = [0, 0], sizes = [2, 32], strides = [1, 1]} : vector<2x128xf32> to vector<2x32xf32>
    %118 = vector.extract_strided_slice %115 {offsets = [0, 32], sizes = [2, 32], strides = [1, 1]} : vector<2x128xf32> to vector<2x32xf32>
    %119 = vector.extract_strided_slice %116 {offsets = [0, 64], sizes = [2, 32], strides = [1, 1]} : vector<2x128xf32> to vector<2x32xf32>
    %120 = vector.extract_strided_slice %115 {offsets = [0, 96], sizes = [2, 32], strides = [1, 1]} : vector<2x128xf32> to vector<2x32xf32>
    %121 = arith.mulf %118, %104 : vector<2x32xf32>
    %122 = arith.mulf %117, %119 : vector<2x32xf32>
    %123 = arith.addf %121, %122 : vector<2x32xf32>
    %124 = math.tanh %123 : vector<2x32xf32>
    %125 = arith.mulf %120, %124 : vector<2x32xf32>
    %126 = vector.extract_strided_slice %6 {offsets = [12, 0], sizes = [2, 128], strides = [1, 1]} : vector<16x128xf32> to vector<2x128xf32>
    %127 = arith.truncf %125 : vector<2x32xf32> to vector<2x32xbf16>
    %cst_25 = arith.constant dense<0.000000e+00> : vector<2x128xf32>
    %128 = tpu.matmul %127, %7, %cst_25 {dimension_numbers = #tpu.dot_dimension_numbers<[1], [0], [0], [1], [0, 0, 1, 1], [], []>} : vector<2x32xbf16>, vector<32x128xbf16>, vector<2x128xf32> -> vector<2x128xf32>
    %129 = arith.addf %126, %128 : vector<2x128xf32>
    %130 = arith.negf %129 : vector<2x128xf32>
    %131 = math.exp %130 : vector<2x128xf32>
    %cst_26 = arith.constant 1.000000e+00 : f32
    %132 = vector.broadcast %cst_26 : f32 to vector<2x128xf32>
    %133 = arith.addf %132, %131 : vector<2x128xf32>
    %134 = arith.divf %132, %133 : vector<2x128xf32>
    %135 = math.tanh %129 : vector<2x128xf32>
    %136 = vector.extract_strided_slice %134 {offsets = [0, 0], sizes = [2, 32], strides = [1, 1]} : vector<2x128xf32> to vector<2x32xf32>
    %137 = vector.extract_strided_slice %134 {offsets = [0, 32], sizes = [2, 32], strides = [1, 1]} : vector<2x128xf32> to vector<2x32xf32>
    %138 = vector.extract_strided_slice %135 {offsets = [0, 64], sizes = [2, 32], strides = [1, 1]} : vector<2x128xf32> to vector<2x32xf32>
    %139 = vector.extract_strided_slice %134 {offsets = [0, 96], sizes = [2, 32], strides = [1, 1]} : vector<2x128xf32> to vector<2x32xf32>
    %140 = arith.mulf %137, %123 : vector<2x32xf32>
    %141 = arith.mulf %136, %138 : vector<2x32xf32>
    %142 = arith.addf %140, %141 : vector<2x32xf32>
    %143 = math.tanh %142 : vector<2x32xf32>
    %144 = arith.mulf %139, %143 : vector<2x32xf32>
    %145 = vector.extract_strided_slice %6 {offsets = [14, 0], sizes = [2, 128], strides = [1, 1]} : vector<16x128xf32> to vector<2x128xf32>
    %146 = arith.truncf %144 : vector<2x32xf32> to vector<2x32xbf16>
    %cst_27 = arith.constant dense<0.000000e+00> : vector<2x128xf32>
    %147 = tpu.matmul %146, %7, %cst_27 {dimension_numbers = #tpu.dot_dimension_numbers<[1], [0], [0], [1], [0, 0, 1, 1], [], []>} : vector<2x32xbf16>, vector<32x128xbf16>, vector<2x128xf32> -> vector<2x128xf32>
    %148 = arith.addf %145, %147 : vector<2x128xf32>
    %149 = arith.negf %148 : vector<2x128xf32>
    %150 = math.exp %149 : vector<2x128xf32>
    %cst_28 = arith.constant 1.000000e+00 : f32
    %151 = vector.broadcast %cst_28 : f32 to vector<2x128xf32>
    %152 = arith.addf %151, %150 : vector<2x128xf32>
    %153 = arith.divf %151, %152 : vector<2x128xf32>
    %154 = math.tanh %148 : vector<2x128xf32>
    %155 = vector.extract_strided_slice %153 {offsets = [0, 0], sizes = [2, 32], strides = [1, 1]} : vector<2x128xf32> to vector<2x32xf32>
    %156 = vector.extract_strided_slice %153 {offsets = [0, 32], sizes = [2, 32], strides = [1, 1]} : vector<2x128xf32> to vector<2x32xf32>
    %157 = vector.extract_strided_slice %154 {offsets = [0, 64], sizes = [2, 32], strides = [1, 1]} : vector<2x128xf32> to vector<2x32xf32>
    %158 = vector.extract_strided_slice %153 {offsets = [0, 96], sizes = [2, 32], strides = [1, 1]} : vector<2x128xf32> to vector<2x32xf32>
    %159 = arith.mulf %156, %142 : vector<2x32xf32>
    %160 = arith.mulf %155, %157 : vector<2x32xf32>
    %161 = arith.addf %159, %160 : vector<2x32xf32>
    %162 = math.tanh %161 : vector<2x32xf32>
    %163 = arith.mulf %158, %162 : vector<2x32xf32>
    %164 = arith.truncf %163 : vector<2x32xf32> to vector<2x32xbf16>
    %cst_29 = arith.constant dense<0.000000e+00> : vector<2x128xf32>
    %165 = tpu.matmul %164, %8, %cst_29 {dimension_numbers = #tpu.dot_dimension_numbers<[1], [0], [0], [1], [0, 0, 1, 1], [], []>} : vector<2x32xbf16>, vector<32x128xbf16>, vector<2x128xf32> -> vector<2x128xf32>
    %166 = vector.broadcast %9 : vector<1x128xf32> to vector<2x128xf32>
    %167 = arith.addf %165, %166 : vector<2x128xf32>
    %168 = arith.negf %167 : vector<2x128xf32>
    %169 = math.exp %168 : vector<2x128xf32>
    %cst_30 = arith.constant 1.000000e+00 : f32
    %170 = vector.broadcast %cst_30 : f32 to vector<2x128xf32>
    %171 = arith.addf %170, %169 : vector<2x128xf32>
    %172 = arith.divf %170, %171 : vector<2x128xf32>
    %173 = math.tanh %167 : vector<2x128xf32>
    %174 = vector.extract_strided_slice %172 {offsets = [0, 0], sizes = [2, 32], strides = [1, 1]} : vector<2x128xf32> to vector<2x32xf32>
    %175 = vector.extract_strided_slice %172 {offsets = [0, 32], sizes = [2, 32], strides = [1, 1]} : vector<2x128xf32> to vector<2x32xf32>
    %176 = vector.extract_strided_slice %173 {offsets = [0, 64], sizes = [2, 32], strides = [1, 1]} : vector<2x128xf32> to vector<2x32xf32>
    %177 = vector.extract_strided_slice %172 {offsets = [0, 96], sizes = [2, 32], strides = [1, 1]} : vector<2x128xf32> to vector<2x32xf32>
    %178 = arith.mulf %175, %161 : vector<2x32xf32>
    %179 = arith.mulf %174, %176 : vector<2x32xf32>
    %180 = arith.addf %178, %179 : vector<2x32xf32>
    %181 = math.tanh %180 : vector<2x32xf32>
    %182 = arith.mulf %177, %181 : vector<2x32xf32>
    %183 = arith.truncf %182 : vector<2x32xf32> to vector<2x32xbf16>
    %cst_31 = arith.constant dense<0.000000e+00> : vector<2x128xf32>
    %184 = tpu.matmul %183, %8, %cst_31 {dimension_numbers = #tpu.dot_dimension_numbers<[1], [0], [0], [1], [0, 0, 1, 1], [], []>} : vector<2x32xbf16>, vector<32x128xbf16>, vector<2x128xf32> -> vector<2x128xf32>
    %185 = vector.broadcast %9 : vector<1x128xf32> to vector<2x128xf32>
    %186 = arith.addf %184, %185 : vector<2x128xf32>
    %187 = arith.negf %186 : vector<2x128xf32>
    %188 = math.exp %187 : vector<2x128xf32>
    %cst_32 = arith.constant 1.000000e+00 : f32
    %189 = vector.broadcast %cst_32 : f32 to vector<2x128xf32>
    %190 = arith.addf %189, %188 : vector<2x128xf32>
    %191 = arith.divf %189, %190 : vector<2x128xf32>
    %192 = math.tanh %186 : vector<2x128xf32>
    %193 = vector.extract_strided_slice %191 {offsets = [0, 0], sizes = [2, 32], strides = [1, 1]} : vector<2x128xf32> to vector<2x32xf32>
    %194 = vector.extract_strided_slice %191 {offsets = [0, 32], sizes = [2, 32], strides = [1, 1]} : vector<2x128xf32> to vector<2x32xf32>
    %195 = vector.extract_strided_slice %192 {offsets = [0, 64], sizes = [2, 32], strides = [1, 1]} : vector<2x128xf32> to vector<2x32xf32>
    %196 = vector.extract_strided_slice %191 {offsets = [0, 96], sizes = [2, 32], strides = [1, 1]} : vector<2x128xf32> to vector<2x32xf32>
    %197 = arith.mulf %194, %180 : vector<2x32xf32>
    %198 = arith.mulf %193, %195 : vector<2x32xf32>
    %199 = arith.addf %197, %198 : vector<2x32xf32>
    %200 = math.tanh %199 : vector<2x32xf32>
    %201 = arith.mulf %196, %200 : vector<2x32xf32>
    %202 = arith.truncf %201 : vector<2x32xf32> to vector<2x32xbf16>
    %cst_33 = arith.constant dense<0.000000e+00> : vector<2x128xf32>
    %203 = tpu.matmul %202, %8, %cst_33 {dimension_numbers = #tpu.dot_dimension_numbers<[1], [0], [0], [1], [0, 0, 1, 1], [], []>} : vector<2x32xbf16>, vector<32x128xbf16>, vector<2x128xf32> -> vector<2x128xf32>
    %204 = vector.broadcast %9 : vector<1x128xf32> to vector<2x128xf32>
    %205 = arith.addf %203, %204 : vector<2x128xf32>
    %206 = arith.negf %205 : vector<2x128xf32>
    %207 = math.exp %206 : vector<2x128xf32>
    %cst_34 = arith.constant 1.000000e+00 : f32
    %208 = vector.broadcast %cst_34 : f32 to vector<2x128xf32>
    %209 = arith.addf %208, %207 : vector<2x128xf32>
    %210 = arith.divf %208, %209 : vector<2x128xf32>
    %211 = math.tanh %205 : vector<2x128xf32>
    %212 = vector.extract_strided_slice %210 {offsets = [0, 0], sizes = [2, 32], strides = [1, 1]} : vector<2x128xf32> to vector<2x32xf32>
    %213 = vector.extract_strided_slice %210 {offsets = [0, 32], sizes = [2, 32], strides = [1, 1]} : vector<2x128xf32> to vector<2x32xf32>
    %214 = vector.extract_strided_slice %211 {offsets = [0, 64], sizes = [2, 32], strides = [1, 1]} : vector<2x128xf32> to vector<2x32xf32>
    %215 = vector.extract_strided_slice %210 {offsets = [0, 96], sizes = [2, 32], strides = [1, 1]} : vector<2x128xf32> to vector<2x32xf32>
    %216 = arith.mulf %213, %199 : vector<2x32xf32>
    %217 = arith.mulf %212, %214 : vector<2x32xf32>
    %218 = arith.addf %216, %217 : vector<2x32xf32>
    %219 = math.tanh %218 : vector<2x32xf32>
    %220 = arith.mulf %215, %219 : vector<2x32xf32>
    %221 = arith.truncf %220 : vector<2x32xf32> to vector<2x32xbf16>
    %cst_35 = arith.constant dense<0.000000e+00> : vector<2x128xf32>
    %222 = tpu.matmul %221, %8, %cst_35 {dimension_numbers = #tpu.dot_dimension_numbers<[1], [0], [0], [1], [0, 0, 1, 1], [], []>} : vector<2x32xbf16>, vector<32x128xbf16>, vector<2x128xf32> -> vector<2x128xf32>
    %223 = vector.broadcast %9 : vector<1x128xf32> to vector<2x128xf32>
    %224 = arith.addf %222, %223 : vector<2x128xf32>
    %225 = arith.negf %224 : vector<2x128xf32>
    %226 = math.exp %225 : vector<2x128xf32>
    %cst_36 = arith.constant 1.000000e+00 : f32
    %227 = vector.broadcast %cst_36 : f32 to vector<2x128xf32>
    %228 = arith.addf %227, %226 : vector<2x128xf32>
    %229 = arith.divf %227, %228 : vector<2x128xf32>
    %230 = math.tanh %224 : vector<2x128xf32>
    %231 = vector.extract_strided_slice %229 {offsets = [0, 0], sizes = [2, 32], strides = [1, 1]} : vector<2x128xf32> to vector<2x32xf32>
    %232 = vector.extract_strided_slice %229 {offsets = [0, 32], sizes = [2, 32], strides = [1, 1]} : vector<2x128xf32> to vector<2x32xf32>
    %233 = vector.extract_strided_slice %230 {offsets = [0, 64], sizes = [2, 32], strides = [1, 1]} : vector<2x128xf32> to vector<2x32xf32>
    %234 = vector.extract_strided_slice %229 {offsets = [0, 96], sizes = [2, 32], strides = [1, 1]} : vector<2x128xf32> to vector<2x32xf32>
    %235 = arith.mulf %232, %218 : vector<2x32xf32>
    %236 = arith.mulf %231, %233 : vector<2x32xf32>
    %237 = arith.addf %235, %236 : vector<2x32xf32>
    %238 = math.tanh %237 : vector<2x32xf32>
    %239 = arith.mulf %234, %238 : vector<2x32xf32>
    %240 = arith.truncf %239 : vector<2x32xf32> to vector<2x32xbf16>
    %cst_37 = arith.constant dense<0.000000e+00> : vector<2x128xf32>
    %241 = tpu.matmul %240, %8, %cst_37 {dimension_numbers = #tpu.dot_dimension_numbers<[1], [0], [0], [1], [0, 0, 1, 1], [], []>} : vector<2x32xbf16>, vector<32x128xbf16>, vector<2x128xf32> -> vector<2x128xf32>
    %242 = vector.broadcast %9 : vector<1x128xf32> to vector<2x128xf32>
    %243 = arith.addf %241, %242 : vector<2x128xf32>
    %244 = arith.negf %243 : vector<2x128xf32>
    %245 = math.exp %244 : vector<2x128xf32>
    %cst_38 = arith.constant 1.000000e+00 : f32
    %246 = vector.broadcast %cst_38 : f32 to vector<2x128xf32>
    %247 = arith.addf %246, %245 : vector<2x128xf32>
    %248 = arith.divf %246, %247 : vector<2x128xf32>
    %249 = math.tanh %243 : vector<2x128xf32>
    %250 = vector.extract_strided_slice %248 {offsets = [0, 0], sizes = [2, 32], strides = [1, 1]} : vector<2x128xf32> to vector<2x32xf32>
    %251 = vector.extract_strided_slice %248 {offsets = [0, 32], sizes = [2, 32], strides = [1, 1]} : vector<2x128xf32> to vector<2x32xf32>
    %252 = vector.extract_strided_slice %249 {offsets = [0, 64], sizes = [2, 32], strides = [1, 1]} : vector<2x128xf32> to vector<2x32xf32>
    %253 = vector.extract_strided_slice %248 {offsets = [0, 96], sizes = [2, 32], strides = [1, 1]} : vector<2x128xf32> to vector<2x32xf32>
    %254 = arith.mulf %251, %237 : vector<2x32xf32>
    %255 = arith.mulf %250, %252 : vector<2x32xf32>
    %256 = arith.addf %254, %255 : vector<2x32xf32>
    %257 = math.tanh %256 : vector<2x32xf32>
    %258 = arith.mulf %253, %257 : vector<2x32xf32>
    %259 = arith.truncf %258 : vector<2x32xf32> to vector<2x32xbf16>
    %cst_39 = arith.constant dense<0.000000e+00> : vector<2x128xf32>
    %260 = tpu.matmul %259, %8, %cst_39 {dimension_numbers = #tpu.dot_dimension_numbers<[1], [0], [0], [1], [0, 0, 1, 1], [], []>} : vector<2x32xbf16>, vector<32x128xbf16>, vector<2x128xf32> -> vector<2x128xf32>
    %261 = vector.broadcast %9 : vector<1x128xf32> to vector<2x128xf32>
    %262 = arith.addf %260, %261 : vector<2x128xf32>
    %263 = arith.negf %262 : vector<2x128xf32>
    %264 = math.exp %263 : vector<2x128xf32>
    %cst_40 = arith.constant 1.000000e+00 : f32
    %265 = vector.broadcast %cst_40 : f32 to vector<2x128xf32>
    %266 = arith.addf %265, %264 : vector<2x128xf32>
    %267 = arith.divf %265, %266 : vector<2x128xf32>
    %268 = math.tanh %262 : vector<2x128xf32>
    %269 = vector.extract_strided_slice %267 {offsets = [0, 0], sizes = [2, 32], strides = [1, 1]} : vector<2x128xf32> to vector<2x32xf32>
    %270 = vector.extract_strided_slice %267 {offsets = [0, 32], sizes = [2, 32], strides = [1, 1]} : vector<2x128xf32> to vector<2x32xf32>
    %271 = vector.extract_strided_slice %268 {offsets = [0, 64], sizes = [2, 32], strides = [1, 1]} : vector<2x128xf32> to vector<2x32xf32>
    %272 = vector.extract_strided_slice %267 {offsets = [0, 96], sizes = [2, 32], strides = [1, 1]} : vector<2x128xf32> to vector<2x32xf32>
    %273 = arith.mulf %270, %256 : vector<2x32xf32>
    %274 = arith.mulf %269, %271 : vector<2x32xf32>
    %275 = arith.addf %273, %274 : vector<2x32xf32>
    %276 = math.tanh %275 : vector<2x32xf32>
    %277 = arith.mulf %272, %276 : vector<2x32xf32>
    %278 = arith.truncf %277 : vector<2x32xf32> to vector<2x32xbf16>
    %cst_41 = arith.constant dense<0.000000e+00> : vector<2x128xf32>
    %279 = tpu.matmul %278, %8, %cst_41 {dimension_numbers = #tpu.dot_dimension_numbers<[1], [0], [0], [1], [0, 0, 1, 1], [], []>} : vector<2x32xbf16>, vector<32x128xbf16>, vector<2x128xf32> -> vector<2x128xf32>
    %280 = vector.broadcast %9 : vector<1x128xf32> to vector<2x128xf32>
    %281 = arith.addf %279, %280 : vector<2x128xf32>
    %282 = arith.negf %281 : vector<2x128xf32>
    %283 = math.exp %282 : vector<2x128xf32>
    %cst_42 = arith.constant 1.000000e+00 : f32
    %284 = vector.broadcast %cst_42 : f32 to vector<2x128xf32>
    %285 = arith.addf %284, %283 : vector<2x128xf32>
    %286 = arith.divf %284, %285 : vector<2x128xf32>
    %287 = math.tanh %281 : vector<2x128xf32>
    %288 = vector.extract_strided_slice %286 {offsets = [0, 0], sizes = [2, 32], strides = [1, 1]} : vector<2x128xf32> to vector<2x32xf32>
    %289 = vector.extract_strided_slice %286 {offsets = [0, 32], sizes = [2, 32], strides = [1, 1]} : vector<2x128xf32> to vector<2x32xf32>
    %290 = vector.extract_strided_slice %287 {offsets = [0, 64], sizes = [2, 32], strides = [1, 1]} : vector<2x128xf32> to vector<2x32xf32>
    %291 = vector.extract_strided_slice %286 {offsets = [0, 96], sizes = [2, 32], strides = [1, 1]} : vector<2x128xf32> to vector<2x32xf32>
    %292 = arith.mulf %289, %275 : vector<2x32xf32>
    %293 = arith.mulf %288, %290 : vector<2x32xf32>
    %294 = arith.addf %292, %293 : vector<2x32xf32>
    %295 = math.tanh %294 : vector<2x32xf32>
    %296 = arith.mulf %291, %295 : vector<2x32xf32>
    %297 = arith.truncf %296 : vector<2x32xf32> to vector<2x32xbf16>
    %cst_43 = arith.constant dense<0.000000e+00> : vector<2x128xf32>
    %298 = tpu.matmul %297, %8, %cst_43 {dimension_numbers = #tpu.dot_dimension_numbers<[1], [0], [0], [1], [0, 0, 1, 1], [], []>} : vector<2x32xbf16>, vector<32x128xbf16>, vector<2x128xf32> -> vector<2x128xf32>
    %299 = vector.broadcast %9 : vector<1x128xf32> to vector<2x128xf32>
    %300 = arith.addf %298, %299 : vector<2x128xf32>
    %301 = arith.negf %300 : vector<2x128xf32>
    %302 = math.exp %301 : vector<2x128xf32>
    %cst_44 = arith.constant 1.000000e+00 : f32
    %303 = vector.broadcast %cst_44 : f32 to vector<2x128xf32>
    %304 = arith.addf %303, %302 : vector<2x128xf32>
    %305 = arith.divf %303, %304 : vector<2x128xf32>
    %306 = math.tanh %300 : vector<2x128xf32>
    %307 = vector.extract_strided_slice %305 {offsets = [0, 0], sizes = [2, 32], strides = [1, 1]} : vector<2x128xf32> to vector<2x32xf32>
    %308 = vector.extract_strided_slice %305 {offsets = [0, 32], sizes = [2, 32], strides = [1, 1]} : vector<2x128xf32> to vector<2x32xf32>
    %309 = vector.extract_strided_slice %306 {offsets = [0, 64], sizes = [2, 32], strides = [1, 1]} : vector<2x128xf32> to vector<2x32xf32>
    %310 = vector.extract_strided_slice %305 {offsets = [0, 96], sizes = [2, 32], strides = [1, 1]} : vector<2x128xf32> to vector<2x32xf32>
    %311 = arith.mulf %308, %294 : vector<2x32xf32>
    %312 = arith.mulf %307, %309 : vector<2x32xf32>
    %313 = arith.addf %311, %312 : vector<2x32xf32>
    %314 = math.tanh %313 : vector<2x32xf32>
    %315 = arith.mulf %310, %314 : vector<2x32xf32>
    %316 = tpu.concatenate %182, %201, %220, %239, %258, %277, %296, %315 in 1 : vector<2x32xf32>, vector<2x32xf32>, vector<2x32xf32>, vector<2x32xf32>, vector<2x32xf32>, vector<2x32xf32>, vector<2x32xf32>, vector<2x32xf32> -> vector<2x256xf32>
    %c0_45 = arith.constant 0 : index
    %c0_46 = arith.constant 0 : index
    %317 = vector.load %arg7[%c0_45, %c0_46] : memref<2x256xf32, #tpu.memory_space<vmem>>, vector<2x256xf32>
    tpu.vector_store %arg7[%c0_45, %c0_46], %316 {strides = array<i32>} : memref<2x256xf32, #tpu.memory_space<vmem>>, vector<2x256xf32>,
    return
  }
  func.func @transform_0(%arg0: i32) -> (i32, i32) {
    %c0_i32 = arith.constant 0 : i32
    %c0_i32_0 = arith.constant 0 : i32
    %c0_i32_1 = arith.constant 0 : i32
    return %c0_i32, %c0_i32_0 : i32, i32
  }
  func.func @transform_1(%arg0: i32) -> (i32, i32) {
    %c0_i32 = arith.constant 0 : i32
    %c0_i32_0 = arith.constant 0 : i32
    %c0_i32_1 = arith.constant 0 : i32
    return %c0_i32, %c0_i32_0 : i32, i32
  }
  func.func @transform_2(%arg0: i32) -> (i32, i32) {
    %c0_i32 = arith.constant 0 : i32
    %c0_i32_0 = arith.constant 0 : i32
    %c0_i32_1 = arith.constant 0 : i32
    return %c0_i32, %c0_i32_0 : i32, i32
  }
  func.func @transform_3(%arg0: i32) -> (i32, i32) {
    %c0_i32 = arith.constant 0 : i32
    %c0_i32_0 = arith.constant 0 : i32
    %c0_i32_1 = arith.constant 0 : i32
    return %c0_i32, %c0_i32_0 : i32, i32
  }
  func.func @transform_4(%arg0: i32) -> (i32, i32) {
    %c0_i32 = arith.constant 0 : i32
    %c0_i32_0 = arith.constant 0 : i32
    %c0_i32_1 = arith.constant 0 : i32
    return %c0_i32, %c0_i32_0 : i32, i32
  }
  func.func @transform_5(%arg0: i32) -> (i32, i32) {
    %c0_i32 = arith.constant 0 : i32
    %c0_i32_0 = arith.constant 0 : i32
    %c0_i32_1 = arith.constant 0 : i32
    return %c0_i32, %c0_i32_0 : i32, i32
  }
  func.func @transform_6(%arg0: i32) -> (i32, i32) {
    %c0_i32 = arith.constant 0 : i32
    %c0_i32_0 = arith.constant 0 : i32
    %c0_i32_1 = arith.constant 0 : i32
    return %c0_i32, %c0_i32_0 : i32, i32
  }
}

</mosaic_0001>

<bundles_post_ra>
// kernel: seq2seq_forward.1
= control target key start
LH: loop header
LB: loop body
LE: loop exit
PB: predicated region body
PF: predicated region fallthrough
CT: control target
= control target key end

     0   :  { %vm39_vm0 = vcmask 130048   ;;  %v1292_v6 = vmov 0   ;;  %vm78_vm5 = vcmask 261120   ;;  %s1503_s1 = inlined_call_operand.vmem [shape: bf16[16,128], index: 1, kind: input, shape index: {}]   ;;  %s1504_s2 = inlined_call_operand.vmem [shape: bf16[32,128], index: 2, kind: input, shape index: {}]   ;;  %s1505_s0 = inlined_call_operand.vmem [shape: f32[16,16], index: 0, kind: input, shape index: {}]   ;;  %s1506_s3 = inlined_call_operand.vmem [shape: f32[1,128], index: 3, kind: input, shape index: {}]   ;;  %s1507_s4 = inlined_call_operand.vmem [shape: bf16[32,128], index: 4, kind: input, shape index: {}]   ;;  %s1508_s5 = inlined_call_operand.vmem [shape: f32[1,128], index: 5, kind: input, shape index: {}]   ;;  %s1509_s6 = inlined_call_operand.vmem [shape: f32[2,256], index: 6, kind: output, shape index: {}]  }
   0x1   :  { %v1153_v0 = vld [vmem:[%s1503_s1] sm:$0xff]  ;;  %v1155_v1 = vld [vmem:[%s1504_s2 + $0x8] sm:$0xff] }
   0x2   :  { %v24_v2 = vld [vmem:[%s1505_s0] sm:$0xff]  ;;  %v25_v3 = vld [vmem:[%s1505_s0 + $0x8] sm:$0xff]  ;;  %50 = vmatpush.bf16.msra.mxu0 %v1153_v0  ;;  %88 = vmatpush.bf16.msra.mxu1 %v1155_v1 }
   0x3   :  { %v26_v4 = vpack.c.bf16 %v25_v3, %v24_v2  ;;  %v1154_v5 = vld [vmem:[%s1504_s2] sm:$0xff]  ;;  %146 = vmatpush.bf16.msra.mxu2 %v1155_v1  ;;  %211 = vmatpush.bf16.msra.mxu3 %v1155_v1  ;;  %s1293_s2 = smov 64  }
   0x4   :  { %v1349_v7 = vld [vmem:[%s1506_s3] ss:$0 sm:$0xff]  ;;  %s1294_s3 = smov 32  }
   0x5   :  { %1105 = vmatmul.msk.bf16.vlgmr.msra.gmra.mxu0 %vm39_vm0, %v26_v4 }
   0x6   :  { %276 = vmatpush.bf16.msrb.mxu0 %v1155_v1  ;;  %89 = vmatpush.bf16.msra.mxu1 %v1154_v5 }
   0x7   :  { %147 = vmatpush.bf16.msra.mxu2 %v1154_v5  ;;  %212 = vmatpush.bf16.msra.mxu3 %v1154_v5 }
   0x9   :  { %90 = vmatmul.bf16.vlgmr.msra.gmra.mxu1 %v1292_v6 }
   0xa   :  { %277 = vmatpush.bf16.msrb.mxu0 %v1154_v5  ;;  %341 = vmatpush.bf16.msrb.mxu1 %v1155_v1 }
   0xb   :  { %402 = vmatpush.bf16.msrb.mxu2 %v1155_v1  ;;  %467 = vmatpush.bf16.msrb.mxu3 %v1155_v1 }
   0xe   :  { %532 = vmatpush.bf16.msra.mxu0 %v1155_v1  ;;  %342 = vmatpush.bf16.msrb.mxu1 %v1154_v5 }
   0xf   :  { %403 = vmatpush.bf16.msrb.mxu2 %v1154_v5  ;;  %468 = vmatpush.bf16.msrb.mxu3 %v1154_v5 }
  0x12   :  { %533 = vmatpush.bf16.msra.mxu0 %v1154_v5 }
  0x82   :  { %v52_v8 = vpop.f32.mrf.mxu0 }
  0x83   :  { %v1352_v9 = vadd.f32 %v1349_v7, %v52_v8 }
  0x86   :  { %v91_v10 = vpop.f32.mrf.mxu1 }
  0x87   :  { %v95_v11 = vadd.f32 %v91_v10, %v1352_v9 }
  0x89   :  { %1164 = vtanh.f32 %v95_v11  ;;  %v1114_v14 = vmul.f32 -1.442695, %v95_v11 }
  0x8b   :  { %1166 = vpow2.f32 %v1114_v14 }
  0x8e   :  { %v93_v12 = vpop.f32.mrf.mxu1 }
  0x8f   :  { %v1165_v13 = vpop.eup %1164 }
  0x90   :  { %118 = vrot.lane.b32.xlu0 %v1165_v13, %s1293_s2 }
  0x91   :  { %v1167_v15 = vpop.eup %1166 }
  0x92   :  { %v99_v16 = vadd.f32 1.0, %v1167_v15 }
  0x94   :  { %1168 = vrcp.f32 %v99_v16  ;;  %v111_v22 = vand.u32 2147483648, %v99_v16  ;;  %vm105_vm2 = vweird.f32 %v99_v16  ;;  %v109_v23 = vand.u32 2147483647, %v99_v16 }
  0x96   :  { %v112_v25 = vor.u32 1.1754944e-38, %v111_v22  ;;  %vm110_vm4 = vcmp.eq.f32.partialorder %v109_v23, 8.507059e+37 }
  0x9a   :  { %v1169_v17 = vpop.eup %1168 }
  0x9b   :  { %v101_v18 = vmul.f32 %v1169_v17, %v99_v16  ;;  %vm106_vm1 = vweird.f32 %v1169_v17 }
  0x9c   :  { %vm107_vm3 = vmor %vm105_vm2, %vm106_vm1 }
  0x9d   :  { %v102_v19 = vsub.f32 1.0, %v101_v18 }
  0x9f   :  { %v103_v20 = vmul.f32 %v1169_v17, %v102_v19 }
  0xa1   :  { %v104_v21 = vadd.f32 %v1169_v17, %v103_v20 }
  0xa3   :  { %v108_v24 = vsel %vm107_vm3, %v1169_v17, %v104_v21 }
  0xa4   :  { %v113_v27 = vsel %vm110_vm4, %v112_v25, %v108_v24 }
  0xa5   :  { %v116_v29 = vmul.f32 0.0, %v113_v27 }
 0x102   :  { %v119_v26 = vpop.permute.xlu0 %118 }
 0x103   :  { %v121_v28 = vmul.f32 %v119_v26, %v113_v27 }
 0x105   :  { %123 = vrot.lane.b32.xlu0 %v121_v28, %s1294_s3 }
 0x177   :  { %v124_v30 = vpop.permute.xlu0 %123 }
 0x178   :  { %v126_v31 = vadd.f32 %v124_v30, %v116_v29 }
 0x17a   :  { %1170 = vtanh.f32 %v126_v31  ;;  %v178_v57 = vrot.slane %v126_v31, 6 }
 0x180   :  { %v1171_v32 = vpop.eup %1170 }
 0x181   :  { %129 = vrot.lane.b32.xlu1 %v1171_v32, %s1293_s2 }
 0x1f3   :  { %v130_v33 = vpop.permute.xlu1 %129 }
 0x1f4   :  { %v132_v34 = vmul.f32 %v130_v33, %v113_v27 }
 0x1f6   :  { %v133_v35 = vpack.c.bf16 %v132_v34, %v132_v34 }
 0x1f8   :  { %135 = vrot.lane.b32.xlu1 %v133_v35, %s1294_s3  ;;  %v54_v35 = vpop.f32.mrf.mxu0 }
 0x26a   :  { %v136_v36 = vpop.permute.xlu1 %135 }
 0x26b   :  { %1115 = vmatmul.msk.bf16.vlgmr.msra.gmra.mxu2 %vm78_vm5, %v136_v36 }
 0x2ee   :  { %v149_v37 = vpop.f32.mrf.mxu2 }
 0x2ef   :  { %v154_v38 = vrot.slane %v149_v37, 6 }
 0x2f1   :  { %v156_v39 = vadd.f32 %v154_v38, %v1352_v9 }
 0x2f3   :  { %1172 = vtanh.f32 %v156_v39  ;;  %v1116_v42 = vmul.f32 -1.442695, %v156_v39 }
 0x2f5   :  { %1174 = vpow2.f32 %v1116_v42 }
 0x2f6   :  { %v151_v40 = vpop.f32.mrf.mxu2 }
 0x2f9   :  { %v1173_v41 = vpop.eup %1172 }
 0x2fa   :  { %182 = vrot.lane.b32.xlu2 %v1173_v41, %s1293_s2 }
 0x2fb   :  { %v1175_v43 = vpop.eup %1174 }
 0x2fc   :  { %v160_v44 = vadd.f32 1.0, %v1175_v43 }
 0x2fe   :  { %1176 = vrcp.f32 %v160_v44  ;;  %v172_v50 = vand.u32 2147483648, %v160_v44  ;;  %vm166_vm7 = vweird.f32 %v160_v44  ;;  %v170_v51 = vand.u32 2147483647, %v160_v44 }
 0x300   :  { %v173_v53 = vor.u32 1.1754944e-38, %v172_v50  ;;  %vm171_vm9 = vcmp.eq.f32.partialorder %v170_v51, 8.507059e+37 }
 0x304   :  { %v1177_v45 = vpop.eup %1176 }
 0x305   :  { %v162_v46 = vmul.f32 %v1177_v45, %v160_v44  ;;  %vm167_vm6 = vweird.f32 %v1177_v45 }
 0x306   :  { %vm168_vm8 = vmor %vm166_vm7, %vm167_vm6 }
 0x307   :  { %v163_v47 = vsub.f32 1.0, %v162_v46 }
 0x309   :  { %v164_v48 = vmul.f32 %v1177_v45, %v163_v47 }
 0x30b   :  { %v165_v49 = vadd.f32 %v1177_v45, %v164_v48 }
 0x30d   :  { %v169_v52 = vsel %vm168_vm8, %v1177_v45, %v165_v49 }
 0x30e   :  { %v174_v55 = vsel %vm171_vm9, %v173_v53, %v169_v52 }
 0x30f   :  { %v180_v58 = vmul.f32 %v178_v57, %v174_v55 }
 0x354   :  { %v183_v54 = vpop.permute.xlu2 %182 }
 0x355   :  { %v185_v56 = vmul.f32 %v183_v54, %v174_v55 }
 0x357   :  { %187 = vrot.lane.b32.xlu2 %v185_v56, %s1294_s3 }
 0x3b1   :  { %v188_v59 = vpop.permute.xlu2 %187 }
 0x3b2   :  { %v190_v60 = vadd.f32 %v188_v59, %v180_v58 }
 0x3b4   :  { %1178 = vtanh.f32 %v190_v60  ;;  %v243_v25 = vrot.slane %v190_v60, 6 }
 0x3ba   :  { %v1179_v61 = vpop.eup %1178 }
 0x3bb   :  { %193 = vrot.lane.b32.xlu0 %v1179_v61, %s1293_s2 }
 0x42d   :  { %v194_v62 = vpop.permute.xlu0 %193 }
 0x42e   :  { %v196_v63 = vmul.f32 %v194_v62, %v174_v55 }
 0x430   :  { %v197_v0 = vpack.c.bf16 %v196_v63, %v196_v63 }
 0x432   :  { %v199_v1 = vrot.slane %v197_v0, 1 }
 0x434   :  { %200 = vrot.lane.b32.xlu1 %v199_v1, %s1294_s3  ;;  %v1379_v1 = vadd.f32 %v1349_v7, %v54_v35 }
 0x4a6   :  { %v201_v2 = vpop.permute.xlu1 %200 }
 0x4a7   :  { %1117 = vmatmul.msk.bf16.vlgmr.msra.gmra.mxu3 %vm78_vm5, %v201_v2 }
 0x52a   :  { %v214_v3 = vpop.f32.mrf.mxu3 }
 0x52b   :  { %v219_v4 = vrot.slane %v214_v3, 4 }
 0x52d   :  { %v221_v5 = vadd.f32 %v219_v4, %v1352_v9 }
 0x52f   :  { %1180 = vtanh.f32 %v221_v5  ;;  %v1118_v10 = vmul.f32 -1.442695, %v221_v5 }
 0x531   :  { %1182 = vpow2.f32 %v1118_v10 }
 0x532   :  { %v216_v6 = vpop.f32.mrf.mxu3 }
 0x535   :  { %v1181_v8 = vpop.eup %1180 }
 0x536   :  { %247 = vrot.lane.b32.xlu2 %v1181_v8, %s1293_s2 }
 0x537   :  { %v1183_v11 = vpop.eup %1182 }
 0x538   :  { %v225_v12 = vadd.f32 1.0, %v1183_v11 }
 0x53a   :  { %1184 = vrcp.f32 %v225_v12  ;;  %v237_v18 = vand.u32 2147483648, %v225_v12  ;;  %vm231_vm11 = vweird.f32 %v225_v12  ;;  %v235_v19 = vand.u32 2147483647, %v225_v12 }
 0x53c   :  { %v238_v21 = vor.u32 1.1754944e-38, %v237_v18  ;;  %vm236_vm13 = vcmp.eq.f32.partialorder %v235_v19, 8.507059e+37 }
 0x540   :  { %v1185_v13 = vpop.eup %1184 }
 0x541   :  { %v227_v14 = vmul.f32 %v1185_v13, %v225_v12  ;;  %vm232_vm10 = vweird.f32 %v1185_v13 }
 0x542   :  { %vm233_vm12 = vmor %vm231_vm11, %vm232_vm10 }
 0x543   :  { %v228_v15 = vsub.f32 1.0, %v227_v14 }
 0x545   :  { %v229_v16 = vmul.f32 %v1185_v13, %v228_v15 }
 0x547   :  { %v230_v17 = vadd.f32 %v1185_v13, %v229_v16 }
 0x549   :  { %v234_v20 = vsel %vm233_vm12, %v1185_v13, %v230_v17 }
 0x54a   :  { %v239_v23 = vsel %vm236_vm13, %v238_v21, %v234_v20 }
 0x54b   :  { %v245_v26 = vmul.f32 %v243_v25, %v239_v23 }
 0x590   :  { %v248_v22 = vpop.permute.xlu2 %247 }
 0x591   :  { %v250_v24 = vmul.f32 %v248_v22, %v239_v23 }
 0x593   :  { %252 = vrot.lane.b32.xlu0 %v250_v24, %s1294_s3 }
 0x605   :  { %v253_v27 = vpop.permute.xlu0 %252 }
 0x606   :  { %v255_v28 = vadd.f32 %v253_v27, %v245_v26 }
 0x608   :  { %1186 = vtanh.f32 %v255_v28  ;;  %v308_v55 = vrot.slane %v255_v28, 6 }
 0x60e   :  { %v1187_v29 = vpop.eup %1186 }
 0x60f   :  { %258 = vrot.lane.b32.xlu1 %v1187_v29, %s1293_s2 }
 0x681   :  { %v259_v30 = vpop.permute.xlu1 %258 }
 0x682   :  { %v261_v31 = vmul.f32 %v259_v30, %v239_v23 }
 0x684   :  { %v262_v32 = vpack.c.bf16 %v261_v31, %v261_v31 }
 0x686   :  { %v264_v33 = vrot.slane %v262_v32, 2 }
 0x688   :  { %265 = vrot.lane.b32.xlu2 %v264_v33, %s1294_s3 }
 0x6e2   :  { %v266_v34 = vpop.permute.xlu2 %265 }
 0x6e3   :  { %1119 = vmatmul.msk.bf16.vlgmr.msrb.gmra.mxu0 %vm78_vm5, %v266_v34 }
 0x760   :  { %v279_v36 = vpop.f32.mrf.mxu0 }
 0x761   :  { %v284_v37 = vrot.slane %v279_v36, 2 }
 0x763   :  { %v286_v38 = vadd.f32 %v284_v37, %v1352_v9 }
 0x765   :  { %1188 = vtanh.f32 %v286_v38  ;;  %v1120_v41 = vmul.f32 -1.442695, %v286_v38 }
 0x767   :  { %1190 = vpow2.f32 %v1120_v41 }
 0x768   :  { %v281_v39 = vpop.f32.mrf.mxu0 }
 0x76b   :  { %v1189_v40 = vpop.eup %1188 }
 0x76c   :  { %312 = vrot.lane.b32.xlu0 %v1189_v40, %s1293_s2 }
 0x76d   :  { %v1191_v42 = vpop.eup %1190 }
 0x76e   :  { %v290_v43 = vadd.f32 1.0, %v1191_v42 }
 0x770   :  { %1192 = vrcp.f32 %v290_v43  ;;  %v302_v49 = vand.u32 2147483648, %v290_v43  ;;  %vm296_vm15 = vweird.f32 %v290_v43  ;;  %v300_v50 = vand.u32 2147483647, %v290_v43 }
 0x772   :  { %v303_v51 = vor.u32 1.1754944e-38, %v302_v49  ;;  %vm301_vm1 = vcmp.eq.f32.partialorder %v300_v50, 8.507059e+37 }
 0x776   :  { %v1193_v44 = vpop.eup %1192 }
 0x777   :  { %v292_v45 = vmul.f32 %v1193_v44, %v290_v43  ;;  %vm297_vm14 = vweird.f32 %v1193_v44 }
 0x778   :  { %vm298_vm0 = vmor %vm296_vm15, %vm297_vm14 }
 0x779   :  { %v293_v46 = vsub.f32 1.0, %v292_v45 }
 0x77b   :  { %v294_v47 = vmul.f32 %v1193_v44, %v293_v46 }
 0x77d   :  { %v295_v48 = vadd.f32 %v1193_v44, %v294_v47 }
 0x77f   :  { %v299_v9 = vsel %vm298_vm0, %v1193_v44, %v295_v48 }
 0x780   :  { %v304_v53 = vsel %vm301_vm1, %v303_v51, %v299_v9 }
 0x781   :  { %v310_v56 = vmul.f32 %v308_v55, %v304_v53 }
 0x7de   :  { %v313_v52 = vpop.permute.xlu0 %312 }
 0x7df   :  { %v315_v54 = vmul.f32 %v313_v52, %v304_v53 }
 0x7e1   :  { %317 = vrot.lane.b32.xlu1 %v315_v54, %s1294_s3 }
 0x853   :  { %v318_v57 = vpop.permute.xlu1 %317 }
 0x854   :  { %v320_v58 = vadd.f32 %v318_v57, %v310_v56 }
 0x856   :  { %1194 = vtanh.f32 %v320_v58  ;;  %v370_v22 = vrot.slane %v320_v58, 6 }
 0x85c   :  { %v1195_v59 = vpop.eup %1194 }
 0x85d   :  { %323 = vrot.lane.b32.xlu2 %v1195_v59, %s1293_s2 }
 0x8b7   :  { %v324_v60 = vpop.permute.xlu2 %323 }
 0x8b8   :  { %v326_v61 = vmul.f32 %v324_v60, %v304_v53 }
 0x8ba   :  { %v327_v62 = vpack.c.bf16 %v326_v61, %v326_v61 }
 0x8bc   :  { %v329_v63 = vrot.slane %v327_v62, 3 }
 0x8be   :  { %330 = vrot.lane.b32.xlu0 %v329_v63, %s1294_s3 }
 0x930   :  { %v331_v0 = vpop.permute.xlu0 %330 }
 0x931   :  { %1121 = vmatmul.msk.bf16.vlgmr.msrb.gmra.mxu1 %vm78_vm5, %v331_v0 }
 0x9ae   :  { %v344_v2 = vpop.f32.mrf.mxu1 }
 0x9af   :  { %v348_v3 = vadd.f32 %v344_v2, %v1379_v1 }
 0x9b1   :  { %1196 = vtanh.f32 %v348_v3  ;;  %v1122_v6 = vmul.f32 -1.442695, %v348_v3 }
 0x9b3   :  { %1198 = vpow2.f32 %v1122_v6 }
 0x9b6   :  { %v346_v4 = vpop.f32.mrf.mxu1 }
 0x9b7   :  { %v1197_v5 = vpop.eup %1196 }
 0x9b8   :  { %374 = vrot.lane.b32.xlu1 %v1197_v5, %s1293_s2 }
 0x9b9   :  { %v1199_v8 = vpop.eup %1198 }
 0x9ba   :  { %v352_v10 = vadd.f32 1.0, %v1199_v8 }
 0x9bc   :  { %1200 = vrcp.f32 %v352_v10  ;;  %v364_v7 = vand.u32 2147483648, %v352_v10  ;;  %vm358_vm3 = vweird.f32 %v352_v10  ;;  %v362_v16 = vand.u32 2147483647, %v352_v10 }
 0x9be   :  { %v365_v18 = vor.u32 1.1754944e-38, %v364_v7  ;;  %vm363_vm6 = vcmp.eq.f32.partialorder %v362_v16, 8.507059e+37 }
 0x9c2   :  { %v1201_v11 = vpop.eup %1200 }
 0x9c3   :  { %v354_v12 = vmul.f32 %v1201_v11, %v352_v10  ;;  %vm359_vm2 = vweird.f32 %v1201_v11 }
 0x9c4   :  { %vm360_vm4 = vmor %vm358_vm3, %vm359_vm2 }
 0x9c5   :  { %v355_v13 = vsub.f32 1.0, %v354_v12 }
 0x9c7   :  { %v356_v14 = vmul.f32 %v1201_v11, %v355_v13 }
 0x9c9   :  { %v357_v15 = vadd.f32 %v1201_v11, %v356_v14 }
 0x9cb   :  { %v361_v17 = vsel %vm360_vm4, %v1201_v11, %v357_v15 }
 0x9cc   :  { %v366_v20 = vsel %vm363_vm6, %v365_v18, %v361_v17 }
 0x9cd   :  { %v372_v23 = vmul.f32 %v370_v22, %v366_v20 }
 0xa2a   :  { %v375_v19 = vpop.permute.xlu1 %374 }
 0xa2b   :  { %v377_v21 = vmul.f32 %v375_v19, %v366_v20 }
 0xa2d   :  { %379 = vrot.lane.b32.xlu2 %v377_v21, %s1294_s3 }
 0xa87   :  { %v380_v24 = vpop.permute.xlu2 %379 }
 0xa88   :  { %v382_v25 = vadd.f32 %v380_v24, %v372_v23 }
 0xa8a   :  { %1202 = vtanh.f32 %v382_v25  ;;  %v434_v9 = vrot.slane %v382_v25, 6 }
 0xa90   :  { %v1203_v26 = vpop.eup %1202 }
 0xa91   :  { %385 = vrot.lane.b32.xlu0 %v1203_v26, %s1293_s2 }
 0xb03   :  { %v386_v27 = vpop.permute.xlu0 %385 }
 0xb04   :  { %v388_v28 = vmul.f32 %v386_v27, %v366_v20 }
 0xb06   :  { %v389_v29 = vpack.c.bf16 %v388_v28, %v388_v28 }
 0xb08   :  { %391 = vrot.lane.b32.xlu1 %v389_v29, %s1294_s3 }
 0xb7a   :  { %v392_v30 = vpop.permute.xlu1 %391 }
 0xb7b   :  { %1123 = vmatmul.msk.bf16.vlgmr.msrb.gmra.mxu2 %vm78_vm5, %v392_v30 }
 0xbfe   :  { %v405_v31 = vpop.f32.mrf.mxu2 }
 0xbff   :  { %v410_v32 = vrot.slane %v405_v31, 6 }
 0xc01   :  { %v412_v33 = vadd.f32 %v410_v32, %v1379_v1 }
 0xc03   :  { %1204 = vtanh.f32 %v412_v33  ;;  %v1124_v36 = vmul.f32 -1.442695, %v412_v33 }
 0xc05   :  { %1206 = vpow2.f32 %v1124_v36 }
 0xc06   :  { %v407_v34 = vpop.f32.mrf.mxu2 }
 0xc09   :  { %v1205_v35 = vpop.eup %1204 }
 0xc0a   :  { %438 = vrot.lane.b32.xlu2 %v1205_v35, %s1293_s2 }
 0xc0b   :  { %v1207_v37 = vpop.eup %1206 }
 0xc0c   :  { %v416_v38 = vadd.f32 1.0, %v1207_v37 }
 0xc0e   :  { %1208 = vrcp.f32 %v416_v38  ;;  %v428_v44 = vand.u32 2147483648, %v416_v38  ;;  %vm422_vm8 = vweird.f32 %v416_v38  ;;  %v426_v45 = vand.u32 2147483647, %v416_v38 }
 0xc10   :  { %v429_v47 = vor.u32 1.1754944e-38, %v428_v44  ;;  %vm427_vm10 = vcmp.eq.f32.partialorder %v426_v45, 8.507059e+37 }
 0xc14   :  { %v1209_v39 = vpop.eup %1208 }
 0xc15   :  { %v418_v40 = vmul.f32 %v1209_v39, %v416_v38  ;;  %vm423_vm7 = vweird.f32 %v1209_v39 }
 0xc16   :  { %vm424_vm9 = vmor %vm422_vm8, %vm423_vm7 }
 0xc17   :  { %v419_v41 = vsub.f32 1.0, %v418_v40 }
 0xc19   :  { %v420_v42 = vmul.f32 %v1209_v39, %v419_v41 }
 0xc1b   :  { %v421_v43 = vadd.f32 %v1209_v39, %v420_v42 }
 0xc1d   :  { %v425_v46 = vsel %vm424_vm9, %v1209_v39, %v421_v43 }
 0xc1e   :  { %v430_v49 = vsel %vm427_vm10, %v429_v47, %v425_v46 }
 0xc1f   :  { %v436_v51 = vmul.f32 %v434_v9, %v430_v49 }
 0xc64   :  { %v439_v48 = vpop.permute.xlu2 %438 }
 0xc65   :  { %v441_v50 = vmul.f32 %v439_v48, %v430_v49 }
 0xc67   :  { %443 = vrot.lane.b32.xlu0 %v441_v50, %s1294_s3 }
 0xcd9   :  { %v444_v52 = vpop.permute.xlu0 %443 }
 0xcda   :  { %v446_v53 = vadd.f32 %v444_v52, %v436_v51  ;;  %v1157_v51 = vld [vmem:[%s1507_s4 + $0x8] sm:$0xff]  ;;  %v1156_v52 = vld [vmem:[%s1507_s4] sm:$0xff] }
 0xcdb   :  { %612 = vmatpush.bf16.msra.mxu1 %v1157_v51  ;;  %672 = vmatpush.bf16.msra.mxu2 %v1157_v51 }
 0xcdc   :  { %1210 = vtanh.f32 %v446_v53  ;;  %v499_v18 = vrot.slane %v446_v53, 6  ;;  %729 = vmatpush.bf16.msra.mxu3 %v1157_v51  ;;  %786 = vmatpush.bf16.msrb.mxu0 %v1157_v51 }
 0xcdf   :  { %613 = vmatpush.bf16.msra.mxu1 %v1156_v52  ;;  %673 = vmatpush.bf16.msra.mxu2 %v1156_v52 }
 0xce0   :  { %730 = vmatpush.bf16.msra.mxu3 %v1156_v52  ;;  %787 = vmatpush.bf16.msrb.mxu0 %v1156_v52 }
 0xce2   :  { %v1211_v54 = vpop.eup %1210 }
 0xce3   :  { %449 = vrot.lane.b32.xlu1 %v1211_v54, %s1293_s2  ;;  %843 = vmatpush.bf16.msrb.mxu1 %v1157_v51 }
 0xce4   :  { %900 = vmatpush.bf16.msrb.mxu2 %v1157_v51 }
 0xce7   :  { %844 = vmatpush.bf16.msrb.mxu1 %v1156_v52 }
 0xce8   :  { %901 = vmatpush.bf16.msrb.mxu2 %v1156_v52 }
 0xd55   :  { %v450_v55 = vpop.permute.xlu1 %449 }
 0xd56   :  { %v452_v56 = vmul.f32 %v450_v55, %v430_v49 }
 0xd58   :  { %v453_v57 = vpack.c.bf16 %v452_v56, %v452_v56 }
 0xd5a   :  { %v455_v58 = vrot.slane %v453_v57, 1 }
 0xd5c   :  { %456 = vrot.lane.b32.xlu2 %v455_v58, %s1294_s3  ;;  %v1414_v58 = vld [vmem:[%s1508_s5] ss:$0 sm:$0xff]  ;;  %s1295_s5 = smov 96  }
 0xdb6   :  { %v457_v59 = vpop.permute.xlu2 %456 }
 0xdb7   :  { %1125 = vmatmul.msk.bf16.vlgmr.msrb.gmra.mxu3 %vm78_vm5, %v457_v59 }
 0xdb8   :  { %957 = vmatpush.bf16.msrb.mxu3 %v1157_v51 }
 0xdbc   :  { %958 = vmatpush.bf16.msrb.mxu3 %v1156_v52 }
 0xe3a   :  { %v470_v60 = vpop.f32.mrf.mxu3 }
 0xe3b   :  { %v475_v61 = vrot.slane %v470_v60, 4 }
 0xe3d   :  { %v477_v62 = vadd.f32 %v475_v61, %v1379_v1 }
 0xe3f   :  { %1212 = vtanh.f32 %v477_v62  ;;  %v1126_v2 = vmul.f32 -1.442695, %v477_v62 }
 0xe41   :  { %1214 = vpow2.f32 %v1126_v2 }
 0xe42   :  { %v472_v63 = vpop.f32.mrf.mxu3 }
 0xe45   :  { %v1213_v0 = vpop.eup %1212 }
 0xe46   :  { %503 = vrot.lane.b32.xlu0 %v1213_v0, %s1293_s2 }
 0xe47   :  { %v1215_v3 = vpop.eup %1214 }
 0xe48   :  { %v481_v4 = vadd.f32 1.0, %v1215_v3 }
 0xe4a   :  { %1216 = vrcp.f32 %v481_v4  ;;  %v493_v12 = vand.u32 2147483648, %v481_v4  ;;  %vm487_vm12 = vweird.f32 %v481_v4  ;;  %v491_v13 = vand.u32 2147483647, %v481_v4 }
 0xe4c   :  { %v494_v15 = vor.u32 1.1754944e-38, %v493_v12  ;;  %vm492_vm14 = vcmp.eq.f32.partialorder %v491_v13, 8.507059e+37 }
 0xe50   :  { %v1217_v5 = vpop.eup %1216 }
 0xe51   :  { %v483_v6 = vmul.f32 %v1217_v5, %v481_v4  ;;  %vm488_vm11 = vweird.f32 %v1217_v5 }
 0xe52   :  { %vm489_vm13 = vmor %vm487_vm12, %vm488_vm11 }
 0xe53   :  { %v484_v8 = vsub.f32 1.0, %v483_v6 }
 0xe55   :  { %v485_v10 = vmul.f32 %v1217_v5, %v484_v8 }
 0xe57   :  { %v486_v11 = vadd.f32 %v1217_v5, %v485_v10 }
 0xe59   :  { %v490_v14 = vsel %vm489_vm13, %v1217_v5, %v486_v11 }
 0xe5a   :  { %v495_v16 = vsel %vm492_vm14, %v494_v15, %v490_v14 }
 0xe5b   :  { %v501_v19 = vmul.f32 %v499_v18, %v495_v16 }
 0xeb8   :  { %v504_v7 = vpop.permute.xlu0 %503 }
 0xeb9   :  { %v506_v17 = vmul.f32 %v504_v7, %v495_v16 }
 0xebb   :  { %508 = vrot.lane.b32.xlu1 %v506_v17, %s1294_s3 }
 0xf2d   :  { %v509_v20 = vpop.permute.xlu1 %508 }
 0xf2e   :  { %v511_v21 = vadd.f32 %v509_v20, %v501_v19 }
 0xf30   :  { %1218 = vtanh.f32 %v511_v21  ;;  %v564_v47 = vrot.slane %v511_v21, 6 }
 0xf36   :  { %v1219_v22 = vpop.eup %1218 }
 0xf37   :  { %514 = vrot.lane.b32.xlu2 %v1219_v22, %s1293_s2 }
 0xf91   :  { %v515_v23 = vpop.permute.xlu2 %514 }
 0xf92   :  { %v517_v24 = vmul.f32 %v515_v23, %v495_v16 }
 0xf94   :  { %v518_v25 = vpack.c.bf16 %v517_v24, %v517_v24 }
 0xf96   :  { %v520_v26 = vrot.slane %v518_v25, 2 }
 0xf98   :  { %521 = vrot.lane.b32.xlu0 %v520_v26, %s1294_s3 }
0x100a   :  { %v522_v27 = vpop.permute.xlu0 %521 }
0x100b   :  { %1127 = vmatmul.msk.bf16.vlgmr.msra.gmra.mxu0 %vm78_vm5, %v522_v27 }
0x100c   :  { %1014 = vmatpush.bf16.msra.mxu0 %v1157_v51 }
0x1010   :  { %1015 = vmatpush.bf16.msra.mxu0 %v1156_v52 }
0x1088   :  { %v535_v28 = vpop.f32.mrf.mxu0 }
0x1089   :  { %v540_v29 = vrot.slane %v535_v28, 2 }
0x108b   :  { %v542_v30 = vadd.f32 %v540_v29, %v1379_v1 }
0x108d   :  { %1220 = vtanh.f32 %v542_v30  ;;  %v1128_v33 = vmul.f32 -1.442695, %v542_v30 }
0x108f   :  { %1222 = vpow2.f32 %v1128_v33 }
0x1090   :  { %v537_v31 = vpop.f32.mrf.mxu0 }
0x1093   :  { %v1221_v32 = vpop.eup %1220 }
0x1094   :  { %568 = vrot.lane.b32.xlu1 %v1221_v32, %s1293_s2 }
0x1095   :  { %v1223_v34 = vpop.eup %1222 }
0x1096   :  { %v546_v35 = vadd.f32 1.0, %v1223_v34 }
0x1098   :  { %1224 = vrcp.f32 %v546_v35  ;;  %v558_v41 = vand.u32 2147483648, %v546_v35  ;;  %vm552_vm0 = vweird.f32 %v546_v35  ;;  %v556_v42 = vand.u32 2147483647, %v546_v35 }
0x109a   :  { %v559_v43 = vor.u32 1.1754944e-38, %v558_v41  ;;  %vm557_vm2 = vcmp.eq.f32.partialorder %v556_v42, 8.507059e+37 }
0x109e   :  { %v1225_v36 = vpop.eup %1224 }
0x109f   :  { %v548_v37 = vmul.f32 %v1225_v36, %v546_v35  ;;  %vm553_vm15 = vweird.f32 %v1225_v36 }
0x10a0   :  { %vm554_vm1 = vmor %vm552_vm0, %vm553_vm15 }
0x10a1   :  { %v549_v38 = vsub.f32 1.0, %v548_v37 }
0x10a3   :  { %v550_v39 = vmul.f32 %v1225_v36, %v549_v38 }
0x10a5   :  { %v551_v40 = vadd.f32 %v1225_v36, %v550_v39 }
0x10a7   :  { %v555_v1 = vsel %vm554_vm1, %v1225_v36, %v551_v40 }
0x10a8   :  { %v560_v45 = vsel %vm557_vm2, %v559_v43, %v555_v1 }
0x10a9   :  { %v566_v48 = vmul.f32 %v564_v47, %v560_v45 }
0x1106   :  { %v569_v44 = vpop.permute.xlu1 %568 }
0x1107   :  { %v571_v46 = vmul.f32 %v569_v44, %v560_v45 }
0x1109   :  { %573 = vrot.lane.b32.xlu2 %v571_v46, %s1294_s3 }
0x1163   :  { %v574_v49 = vpop.permute.xlu2 %573 }
0x1164   :  { %v576_v50 = vadd.f32 %v574_v49, %v566_v48 }
0x1166   :  { %1226 = vtanh.f32 %v576_v50  ;;  %v640_v16 = vrot.slane %v576_v50, 6 }
0x116c   :  { %v1227_v9 = vpop.eup %1226 }
0x116d   :  { %579 = vrot.lane.b32.xlu0 %v1227_v9, %s1293_s2 }
0x11df   :  { %v580_v53 = vpop.permute.xlu0 %579 }
0x11e0   :  { %v582_v54 = vmul.f32 %v580_v53, %v560_v45 }
0x11e2   :  { %v583_v55 = vpack.c.bf16 %v582_v54, %v582_v54 }
0x11e4   :  { %v588_v56 = vrot.slane %v583_v55, 3 }
0x11e6   :  { %589 = vrot.lane.b32.xlu1 %v588_v56, %s1294_s3 }
0x1258   :  { %v590_v57 = vpop.permute.xlu1 %589 }
0x1259   :  { %1137 = vmatmul.msk.bf16.vlgmr.msra.gmra.mxu1 %vm78_vm5, %v590_v57 }
0x12d6   :  { %v615_v59 = vpop.f32.mrf.mxu1 }
0x12d7   :  { %v616_v60 = vadd.f32 %v1414_v58, %v615_v59 }
0x12d9   :  { %1228 = vtanh.f32 %v616_v60  ;;  %v1138_v63 = vmul.f32 -1.442695, %v616_v60 }
0x12db   :  { %1230 = vpow2.f32 %v1138_v63 }
0x12de   :  { %v617_v61 = vpop.f32.mrf.mxu1 }
0x12df   :  { %v1229_v62 = vpop.eup %1228 }
0x12e0   :  { %644 = vrot.lane.b32.xlu2 %v1229_v62, %s1293_s2 }
0x12e1   :  { %v1231_v0 = vpop.eup %1230 }
0x12e2   :  { %v622_v2 = vadd.f32 1.0, %v1231_v0 }
0x12e4   :  { %1232 = vrcp.f32 %v622_v2  ;;  %v634_v10 = vand.u32 2147483648, %v622_v2  ;;  %vm628_vm4 = vweird.f32 %v622_v2  ;;  %v632_v11 = vand.u32 2147483647, %v622_v2 }
0x12e6   :  { %v635_v13 = vor.u32 1.1754944e-38, %v634_v10  ;;  %vm633_vm7 = vcmp.eq.f32.partialorder %v632_v11, 8.507059e+37 }
0x12ea   :  { %v1233_v3 = vpop.eup %1232 }
0x12eb   :  { %v624_v4 = vmul.f32 %v1233_v3, %v622_v2  ;;  %vm629_vm3 = vweird.f32 %v1233_v3 }
0x12ec   :  { %vm630_vm6 = vmor %vm628_vm4, %vm629_vm3 }
0x12ed   :  { %v625_v5 = vsub.f32 1.0, %v624_v4 }
0x12ef   :  { %v626_v6 = vmul.f32 %v1233_v3, %v625_v5 }
0x12f1   :  { %v627_v8 = vadd.f32 %v1233_v3, %v626_v6 }
0x12f3   :  { %v631_v12 = vsel %vm630_vm6, %v1233_v3, %v627_v8 }
0x12f4   :  { %v636_v15 = vsel %vm633_vm7, %v635_v13, %v631_v12 }
0x12f5   :  { %v642_v17 = vmul.f32 %v640_v16, %v636_v15 }
0x133a   :  { %v645_v14 = vpop.permute.xlu2 %644 }
0x133b   :  { %v647_v7 = vmul.f32 %v645_v14, %v636_v15 }
0x133d   :  { %649 = vrot.lane.b32.xlu0 %v647_v7, %s1294_s3 }
0x13af   :  { %v650_v18 = vpop.permute.xlu0 %649 }
0x13b0   :  { %v652_v19 = vadd.f32 %v650_v18, %v642_v17 }
0x13b2   :  { %1234 = vtanh.f32 %v652_v19 }
0x13b8   :  { %v1235_v20 = vpop.eup %1234 }
0x13b9   :  { %655 = vrot.lane.b32.xlu1 %v1235_v20, %s1293_s2 }
0x142b   :  { %v656_v21 = vpop.permute.xlu1 %655 }
0x142c   :  { %v1420_v22 = vmul.f32 %v656_v21, %v636_v15 }
0x142e   :  { %v659_v23 = vpack.c.bf16 %v1420_v22, %v1420_v22 }
0x1430   :  { %661 = vrot.lane.b32.xlu2 %v659_v23, %s1294_s3 }
0x148a   :  { %v662_v24 = vpop.permute.xlu2 %661 }
0x148b   :  { %1139 = vmatmul.msk.bf16.vlgmr.msra.gmra.mxu2 %vm78_vm5, %v662_v24 }
0x150e   :  { %v675_v25 = vpop.f32.mrf.mxu2 }
0x150f   :  { %v676_v26 = vadd.f32 %v1414_v58, %v675_v25 }
0x1511   :  { %1236 = vtanh.f32 %v676_v26  ;;  %v1140_v29 = vmul.f32 -1.442695, %v676_v26 }
0x1513   :  { %1238 = vpow2.f32 %v1140_v29 }
0x1516   :  { %v677_v27 = vpop.f32.mrf.mxu2 }
0x1517   :  { %v1237_v28 = vpop.eup %1236 }
0x1518   :  { %701 = vrot.lane.b32.xlu0 %v1237_v28, %s1293_s2 }
0x1519   :  { %v1239_v30 = vpop.eup %1238 }
0x151a   :  { %v682_v31 = vadd.f32 1.0, %v1239_v30 }
0x151c   :  { %1240 = vrcp.f32 %v682_v31  ;;  %v694_v37 = vand.u32 2147483648, %v682_v31  ;;  %vm688_vm9 = vweird.f32 %v682_v31  ;;  %v692_v38 = vand.u32 2147483647, %v682_v31 }
0x151e   :  { %v695_v40 = vor.u32 1.1754944e-38, %v694_v37  ;;  %vm693_vm11 = vcmp.eq.f32.partialorder %v692_v38, 8.507059e+37 }
0x1522   :  { %v1241_v32 = vpop.eup %1240 }
0x1523   :  { %v684_v33 = vmul.f32 %v1241_v32, %v682_v31  ;;  %vm689_vm8 = vweird.f32 %v1241_v32 }
0x1524   :  { %vm690_vm10 = vmor %vm688_vm9, %vm689_vm8 }
0x1525   :  { %v685_v34 = vsub.f32 1.0, %v684_v33 }
0x1527   :  { %v686_v35 = vmul.f32 %v1241_v32, %v685_v34 }
0x1529   :  { %v687_v36 = vadd.f32 %v1241_v32, %v686_v35 }
0x152b   :  { %v691_v39 = vsel %vm690_vm10, %v1241_v32, %v687_v36 }
0x152c   :  { %v696_v42 = vsel %vm693_vm11, %v695_v40, %v691_v39 }
0x152d   :  { %v699_v43 = vmul.f32 %v696_v42, %v652_v19 }
0x158a   :  { %v702_v41 = vpop.permute.xlu0 %701 }
0x158b   :  { %v704_v1 = vmul.f32 %v702_v41, %v696_v42 }
0x158d   :  { %706 = vrot.lane.b32.xlu1 %v704_v1, %s1294_s3 }
0x15ff   :  { %v707_v44 = vpop.permute.xlu1 %706 }
0x1600   :  { %v709_v45 = vadd.f32 %v707_v44, %v699_v43 }
0x1602   :  { %1242 = vtanh.f32 %v709_v45 }
0x1608   :  { %v1243_v46 = vpop.eup %1242 }
0x1609   :  { %712 = vrot.lane.b32.xlu2 %v1243_v46, %s1293_s2 }
0x1663   :  { %v713_v47 = vpop.permute.xlu2 %712 }
0x1664   :  { %v1430_v48 = vmul.f32 %v713_v47, %v696_v42 }
0x1666   :  { %v716_v49 = vpack.c.bf16 %v1430_v48, %v1430_v48 }
0x1668   :  { %718 = vrot.lane.b32.xlu0 %v716_v49, %s1294_s3 }
0x16da   :  { %v719_v50 = vpop.permute.xlu0 %718 }
0x16db   :  { %1141 = vmatmul.msk.bf16.vlgmr.msra.gmra.mxu3 %vm78_vm5, %v719_v50 }
0x175e   :  { %v732_v9 = vpop.f32.mrf.mxu3 }
0x175f   :  { %v733_v51 = vadd.f32 %v1414_v58, %v732_v9 }
0x1761   :  { %1244 = vtanh.f32 %v733_v51  ;;  %v1142_v54 = vmul.f32 -1.442695, %v733_v51 }
0x1763   :  { %1246 = vpow2.f32 %v1142_v54 }
0x1766   :  { %v734_v52 = vpop.f32.mrf.mxu3 }
0x1767   :  { %v1245_v53 = vpop.eup %1244 }
0x1768   :  { %758 = vrot.lane.b32.xlu1 %v1245_v53, %s1293_s2 }
0x1769   :  { %v1247_v55 = vpop.eup %1246 }
0x176a   :  { %v739_v56 = vadd.f32 1.0, %v1247_v55 }
0x176c   :  { %1248 = vrcp.f32 %v739_v56  ;;  %v751_v63 = vand.u32 2147483648, %v739_v56  ;;  %vm745_vm13 = vweird.f32 %v739_v56  ;;  %v749_v0 = vand.u32 2147483647, %v739_v56 }
0x176e   :  { %v752_v3 = vor.u32 1.1754944e-38, %v751_v63  ;;  %vm750_vm15 = vcmp.eq.f32.partialorder %v749_v0, 8.507059e+37 }
0x1772   :  { %v1249_v57 = vpop.eup %1248 }
0x1773   :  { %v741_v59 = vmul.f32 %v1249_v57, %v739_v56  ;;  %vm746_vm12 = vweird.f32 %v1249_v57 }
0x1774   :  { %vm747_vm14 = vmor %vm745_vm13, %vm746_vm12 }
0x1775   :  { %v742_v60 = vsub.f32 1.0, %v741_v59 }
0x1777   :  { %v743_v61 = vmul.f32 %v1249_v57, %v742_v60 }
0x1779   :  { %v744_v62 = vadd.f32 %v1249_v57, %v743_v61 }
0x177b   :  { %v748_v2 = vsel %vm747_vm14, %v1249_v57, %v744_v62 }
0x177c   :  { %v753_v5 = vsel %vm750_vm15, %v752_v3, %v748_v2 }
0x177d   :  { %v756_v8 = vmul.f32 %v753_v5, %v709_v45 }
0x17da   :  { %v759_v4 = vpop.permute.xlu1 %758 }
0x17db   :  { %v761_v6 = vmul.f32 %v759_v4, %v753_v5 }
0x17dd   :  { %763 = vrot.lane.b32.xlu2 %v761_v6, %s1294_s3 }
0x1837   :  { %v764_v10 = vpop.permute.xlu2 %763 }
0x1838   :  { %v766_v11 = vadd.f32 %v764_v10, %v756_v8 }
0x183a   :  { %1250 = vtanh.f32 %v766_v11 }
0x1840   :  { %v1251_v12 = vpop.eup %1250 }
0x1841   :  { %769 = vrot.lane.b32.xlu0 %v1251_v12, %s1293_s2 }
0x18b3   :  { %v770_v13 = vpop.permute.xlu0 %769 }
0x18b4   :  { %v1440_v14 = vmul.f32 %v770_v13, %v753_v5 }
0x18b6   :  { %v773_v15 = vpack.c.bf16 %v1440_v14, %v1440_v14 }
0x18b8   :  { %775 = vrot.lane.b32.xlu1 %v773_v15, %s1294_s3 }
0x192a   :  { %v776_v7 = vpop.permute.xlu1 %775 }
0x192b   :  { %1143 = vmatmul.msk.bf16.vlgmr.msrb.gmra.mxu0 %vm78_vm5, %v776_v7 }
0x19a8   :  { %v789_v16 = vpop.f32.mrf.mxu0 }
0x19a9   :  { %v790_v17 = vadd.f32 %v1414_v58, %v789_v16 }
0x19ab   :  { %1252 = vtanh.f32 %v790_v17  ;;  %v1144_v20 = vmul.f32 -1.442695, %v790_v17 }
0x19ad   :  { %1254 = vpow2.f32 %v1144_v20 }
0x19b0   :  { %v791_v18 = vpop.f32.mrf.mxu0 }
0x19b1   :  { %v1253_v19 = vpop.eup %1252 }
0x19b2   :  { %815 = vrot.lane.b32.xlu2 %v1253_v19, %s1293_s2 }
0x19b3   :  { %v1255_v21 = vpop.eup %1254 }
0x19b4   :  { %v796_v23 = vadd.f32 1.0, %v1255_v21 }
0x19b6   :  { %1256 = vrcp.f32 %v796_v23  ;;  %v808_v29 = vand.u32 2147483648, %v796_v23  ;;  %vm802_vm1 = vweird.f32 %v796_v23  ;;  %v806_v30 = vand.u32 2147483647, %v796_v23 }
0x19b8   :  { %v809_v32 = vor.u32 1.1754944e-38, %v808_v29  ;;  %vm807_vm3 = vcmp.eq.f32.partialorder %v806_v30, 8.507059e+37 }
0x19bc   :  { %v1257_v24 = vpop.eup %1256 }
0x19bd   :  { %v798_v25 = vmul.f32 %v1257_v24, %v796_v23  ;;  %vm803_vm0 = vweird.f32 %v1257_v24 }
0x19be   :  { %vm804_vm2 = vmor %vm802_vm1, %vm803_vm0 }
0x19bf   :  { %v799_v26 = vsub.f32 1.0, %v798_v25 }
0x19c1   :  { %v800_v27 = vmul.f32 %v1257_v24, %v799_v26 }
0x19c3   :  { %v801_v28 = vadd.f32 %v1257_v24, %v800_v27 }
0x19c5   :  { %v805_v31 = vsel %vm804_vm2, %v1257_v24, %v801_v28 }
0x19c6   :  { %v810_v34 = vsel %vm807_vm3, %v809_v32, %v805_v31 }
0x19c7   :  { %v813_v36 = vmul.f32 %v810_v34, %v766_v11 }
0x1a0c   :  { %v816_v33 = vpop.permute.xlu2 %815 }
0x1a0d   :  { %v818_v35 = vmul.f32 %v816_v33, %v810_v34 }
0x1a0f   :  { %820 = vrot.lane.b32.xlu0 %v818_v35, %s1294_s3 }
0x1a81   :  { %v821_v37 = vpop.permute.xlu0 %820 }
0x1a82   :  { %v823_v38 = vadd.f32 %v821_v37, %v813_v36 }
0x1a84   :  { %1258 = vtanh.f32 %v823_v38 }
0x1a8a   :  { %v1259_v39 = vpop.eup %1258 }
0x1a8b   :  { %826 = vrot.lane.b32.xlu1 %v1259_v39, %s1293_s2 }
0x1afd   :  { %v827_v40 = vpop.permute.xlu1 %826 }
0x1afe   :  { %v1450_v41 = vmul.f32 %v827_v40, %v810_v34 }
0x1b00   :  { %v830_v42 = vpack.c.bf16 %v1450_v41, %v1450_v41 }
0x1b02   :  { %832 = vrot.lane.b32.xlu2 %v830_v42, %s1294_s3 }
0x1b5c   :  { %v833_v1 = vpop.permute.xlu2 %832 }
0x1b5d   :  { %1145 = vmatmul.msk.bf16.vlgmr.msrb.gmra.mxu1 %vm78_vm5, %v833_v1 }
0x1bda   :  { %v846_v43 = vpop.f32.mrf.mxu1 }
0x1bdb   :  { %v847_v44 = vadd.f32 %v1414_v58, %v846_v43 }
0x1bdd   :  { %1260 = vtanh.f32 %v847_v44  ;;  %v1146_v47 = vmul.f32 -1.442695, %v847_v44 }
0x1bdf   :  { %1262 = vpow2.f32 %v1146_v47 }
0x1be2   :  { %v848_v45 = vpop.f32.mrf.mxu1 }
0x1be3   :  { %v1261_v46 = vpop.eup %1260 }
0x1be4   :  { %872 = vrot.lane.b32.xlu0 %v1261_v46, %s1293_s2 }
0x1be5   :  { %v1263_v49 = vpop.eup %1262 }
0x1be6   :  { %v853_v50 = vadd.f32 1.0, %v1263_v49 }
0x1be8   :  { %1264 = vrcp.f32 %v853_v50  ;;  %v865_v55 = vand.u32 2147483648, %v853_v50  ;;  %vm859_vm6 = vweird.f32 %v853_v50  ;;  %v863_v56 = vand.u32 2147483647, %v853_v50 }
0x1bea   :  { %v866_v59 = vor.u32 1.1754944e-38, %v865_v55  ;;  %vm864_vm8 = vcmp.eq.f32.partialorder %v863_v56, 8.507059e+37 }
0x1bee   :  { %v1265_v9 = vpop.eup %1264 }
0x1bef   :  { %v855_v51 = vmul.f32 %v1265_v9, %v853_v50  ;;  %vm860_vm4 = vweird.f32 %v1265_v9 }
0x1bf0   :  { %vm861_vm7 = vmor %vm859_vm6, %vm860_vm4  ;;  %vm1083_vm6 = vcmask 523264  }
0x1bf1   :  { %v856_v52 = vsub.f32 1.0, %v855_v51 }
0x1bf3   :  { %v857_v53 = vmul.f32 %v1265_v9, %v856_v52 }
0x1bf5   :  { %v858_v54 = vadd.f32 %v1265_v9, %v857_v53 }
0x1bf7   :  { %v862_v57 = vsel %vm861_vm7, %v1265_v9, %v858_v54  ;;  %vm1085_vm7 = vcmask 785408  }
0x1bf8   :  { %v867_v61 = vsel %vm864_vm8, %v866_v59, %v862_v57  ;;  %vm1093_vm8 = vcmask 1041408  }
0x1bf9   :  { %v870_v63 = vmul.f32 %v867_v61, %v823_v38 }
0x1c56   :  { %v873_v60 = vpop.permute.xlu0 %872 }
0x1c57   :  { %v875_v62 = vmul.f32 %v873_v60, %v867_v61 }
0x1c59   :  { %877 = vrot.lane.b32.xlu1 %v875_v62, %s1294_s3 }
0x1ccb   :  { %v878_v0 = vpop.permute.xlu1 %877 }
0x1ccc   :  { %v880_v2 = vadd.f32 %v878_v0, %v870_v63 }
0x1cce   :  { %1266 = vtanh.f32 %v880_v2 }
0x1cd4   :  { %v1267_v3 = vpop.eup %1266 }
0x1cd5   :  { %883 = vrot.lane.b32.xlu2 %v1267_v3, %s1293_s2 }
0x1d2f   :  { %v884_v4 = vpop.permute.xlu2 %883 }
0x1d30   :  { %v1460_v5 = vmul.f32 %v884_v4, %v867_v61 }
0x1d32   :  { %v887_v6 = vpack.c.bf16 %v1460_v5, %v1460_v5 }
0x1d34   :  { %889 = vrot.lane.b32.xlu0 %v887_v6, %s1294_s3 }
0x1da6   :  { %v890_v8 = vpop.permute.xlu0 %889 }
0x1da7   :  { %1147 = vmatmul.msk.bf16.vlgmr.msrb.gmra.mxu2 %vm78_vm5, %v890_v8 }
0x1e2a   :  { %v903_v10 = vpop.f32.mrf.mxu2 }
0x1e2b   :  { %v904_v11 = vadd.f32 %v1414_v58, %v903_v10 }
0x1e2d   :  { %1268 = vtanh.f32 %v904_v11  ;;  %v1148_v15 = vmul.f32 -1.442695, %v904_v11 }
0x1e2f   :  { %1270 = vpow2.f32 %v1148_v15 }
0x1e32   :  { %v905_v12 = vpop.f32.mrf.mxu2 }
0x1e33   :  { %v1269_v13 = vpop.eup %1268 }
0x1e34   :  { %929 = vrot.lane.b32.xlu1 %v1269_v13, %s1293_s2 }
0x1e35   :  { %v1271_v7 = vpop.eup %1270 }
0x1e36   :  { %v910_v16 = vadd.f32 1.0, %v1271_v7 }
0x1e38   :  { %1272 = vrcp.f32 %v910_v16  ;;  %v922_v23 = vand.u32 2147483648, %v910_v16  ;;  %vm916_vm10 = vweird.f32 %v910_v16  ;;  %v920_v24 = vand.u32 2147483647, %v910_v16 }
0x1e3a   :  { %v923_v26 = vor.u32 1.1754944e-38, %v922_v23  ;;  %vm921_vm12 = vcmp.eq.f32.partialorder %v920_v24, 8.507059e+37 }
0x1e3e   :  { %v1273_v17 = vpop.eup %1272 }
0x1e3f   :  { %v912_v18 = vmul.f32 %v1273_v17, %v910_v16  ;;  %vm917_vm9 = vweird.f32 %v1273_v17 }
0x1e40   :  { %vm918_vm11 = vmor %vm916_vm10, %vm917_vm9 }
0x1e41   :  { %v913_v19 = vsub.f32 1.0, %v912_v18 }
0x1e43   :  { %v914_v20 = vmul.f32 %v1273_v17, %v913_v19 }
0x1e45   :  { %v915_v21 = vadd.f32 %v1273_v17, %v914_v20 }
0x1e47   :  { %v919_v25 = vsel %vm918_vm11, %v1273_v17, %v915_v21 }
0x1e48   :  { %v924_v28 = vsel %vm921_vm12, %v923_v26, %v919_v25 }
0x1e49   :  { %v927_v30 = vmul.f32 %v924_v28, %v880_v2 }
0x1ea6   :  { %v930_v27 = vpop.permute.xlu1 %929 }
0x1ea7   :  { %v932_v29 = vmul.f32 %v930_v27, %v924_v28 }
0x1ea9   :  { %934 = vrot.lane.b32.xlu2 %v932_v29, %s1294_s3 }
0x1f03   :  { %v935_v31 = vpop.permute.xlu2 %934 }
0x1f04   :  { %v937_v32 = vadd.f32 %v935_v31, %v927_v30 }
0x1f06   :  { %1274 = vtanh.f32 %v937_v32 }
0x1f0c   :  { %v1275_v33 = vpop.eup %1274 }
0x1f0d   :  { %940 = vrot.lane.b32.xlu0 %v1275_v33, %s1293_s2 }
0x1f7f   :  { %v941_v34 = vpop.permute.xlu0 %940 }
0x1f80   :  { %v1470_v35 = vmul.f32 %v941_v34, %v924_v28 }
0x1f82   :  { %v944_v36 = vpack.c.bf16 %v1470_v35, %v1470_v35 }
0x1f84   :  { %946 = vrot.lane.b32.xlu1 %v944_v36, %s1294_s3 }
0x1ff6   :  { %v947_v37 = vpop.permute.xlu1 %946 }
0x1ff7   :  { %1149 = vmatmul.msk.bf16.vlgmr.msrb.gmra.mxu3 %vm78_vm5, %v947_v37 }
0x207a   :  { %v960_v38 = vpop.f32.mrf.mxu3 }
0x207b   :  { %v961_v39 = vadd.f32 %v1414_v58, %v960_v38 }
0x207d   :  { %1276 = vtanh.f32 %v961_v39  ;;  %v1150_v1 = vmul.f32 -1.442695, %v961_v39 }
0x207f   :  { %1278 = vpow2.f32 %v1150_v1 }
0x2082   :  { %v962_v40 = vpop.f32.mrf.mxu3 }
0x2083   :  { %v1277_v42 = vpop.eup %1276 }
0x2084   :  { %986 = vrot.lane.b32.xlu2 %v1277_v42, %s1293_s2 }
0x2085   :  { %v1279_v43 = vpop.eup %1278 }
0x2086   :  { %v967_v44 = vadd.f32 1.0, %v1279_v43 }
0x2088   :  { %1280 = vrcp.f32 %v967_v44  ;;  %v979_v9 = vand.u32 2147483648, %v967_v44  ;;  %vm973_vm14 = vweird.f32 %v967_v44  ;;  %v977_v51 = vand.u32 2147483647, %v967_v44 }
0x208a   :  { %v980_v53 = vor.u32 1.1754944e-38, %v979_v9  ;;  %vm978_vm0 = vcmp.eq.f32.partialorder %v977_v51, 8.507059e+37 }
0x208e   :  { %v1281_v45 = vpop.eup %1280 }
0x208f   :  { %v969_v46 = vmul.f32 %v1281_v45, %v967_v44  ;;  %vm974_vm13 = vweird.f32 %v1281_v45 }
0x2090   :  { %vm975_vm15 = vmor %vm973_vm14, %vm974_vm13 }
0x2091   :  { %v970_v47 = vsub.f32 1.0, %v969_v46 }
0x2093   :  { %v971_v49 = vmul.f32 %v1281_v45, %v970_v47 }
0x2095   :  { %v972_v50 = vadd.f32 %v1281_v45, %v971_v49 }
0x2097   :  { %v976_v52 = vsel %vm975_vm15, %v1281_v45, %v972_v50 }
0x2098   :  { %v981_v55 = vsel %vm978_vm0, %v980_v53, %v976_v52 }
0x2099   :  { %v984_v57 = vmul.f32 %v981_v55, %v937_v32 }
0x20de   :  { %v987_v54 = vpop.permute.xlu2 %986 }
0x20df   :  { %v989_v56 = vmul.f32 %v987_v54, %v981_v55 }
0x20e1   :  { %991 = vrot.lane.b32.xlu0 %v989_v56, %s1294_s3 }
0x2153   :  { %v992_v59 = vpop.permute.xlu0 %991 }
0x2154   :  { %v994_v60 = vadd.f32 %v992_v59, %v984_v57 }
0x2156   :  { %1282 = vtanh.f32 %v994_v60 }
0x215c   :  { %v1283_v61 = vpop.eup %1282 }
0x215d   :  { %997 = vrot.lane.b32.xlu1 %v1283_v61, %s1293_s2 }
0x21cf   :  { %v998_v62 = vpop.permute.xlu1 %997 }
0x21d0   :  { %v1000_v63 = vmul.f32 %v998_v62, %v981_v55 }
0x21d2   :  { %v1001_v0 = vpack.c.bf16 %v1000_v63, %v1000_v63 }
0x21d4   :  { %1003 = vrot.lane.b32.xlu2 %v1001_v0, %s1294_s3 }
0x21dc   :  { %1079 = vrot.lane.b32.xlu2 %v1000_v63, %s1295_s5 }
0x222e   :  { %v1004_v2 = vpop.permute.xlu2 %1003 }
0x222f   :  { %1151 = vmatmul.msk.bf16.vlgmr.msra.gmra.mxu0 %vm78_vm5, %v1004_v2 }
0x2236   :  { %v1080_v27 = vpop.permute.xlu2 %1079 }
0x22ac   :  { %v1017_v3 = vpop.f32.mrf.mxu0 }
0x22ad   :  { %v1018_v4 = vadd.f32 %v1414_v58, %v1017_v3 }
0x22af   :  { %1284 = vtanh.f32 %v1018_v4  ;;  %v1152_v10 = vmul.f32 -1.442695, %v1018_v4 }
0x22b1   :  { %1286 = vpow2.f32 %v1152_v10 }
0x22b4   :  { %v1019_v6 = vpop.f32.mrf.mxu0 }
0x22b5   :  { %v1285_v8 = vpop.eup %1284 }
0x22b6   :  { %1043 = vrot.lane.b32.xlu0 %v1285_v8, %s1293_s2 }
0x22b7   :  { %v1287_v11 = vpop.eup %1286 }
0x22b8   :  { %v1024_v12 = vadd.f32 1.0, %v1287_v11 }
0x22ba   :  { %1288 = vrcp.f32 %v1024_v12  ;;  %v1036_v17 = vand.u32 2147483648, %v1024_v12  ;;  %vm1030_vm2 = vweird.f32 %v1024_v12  ;;  %v1034_v18 = vand.u32 2147483647, %v1024_v12 }
0x22bc   :  { %vm1035_vm4 = vcmp.eq.f32.partialorder %v1034_v18, 8.507059e+37 }
0x22be   :  { %1071 = vrot.lane.b32.xlu0 %v1460_v5, %s1294_s3  ;;  %v1037_v5 = vor.u32 1.1754944e-38, %v1036_v17 }
0x22c0   :  { %v1289_v13 = vpop.eup %1288 }
0x22c1   :  { %v1026_v15 = vmul.f32 %v1289_v13, %v1024_v12  ;;  %vm1031_vm1 = vweird.f32 %v1289_v13 }
0x22c2   :  { %vm1032_vm3 = vmor %vm1030_vm2, %vm1031_vm1 }
0x22c3   :  { %v1027_v7 = vsub.f32 1.0, %v1026_v15 }
0x22c5   :  { %v1028_v58 = vmul.f32 %v1289_v13, %v1027_v7 }
0x22c6   :  { %1059 = vrot.lane.b32.xlu0 %v1420_v22, %s1294_s3 }
0x22c7   :  { %v1029_v16 = vadd.f32 %v1289_v13, %v1028_v58 }
0x22c9   :  { %v1033_v19 = vsel %vm1032_vm3, %v1289_v13, %v1029_v16 }
0x22ca   :  { %v1038_v22 = vsel %vm1035_vm4, %v1037_v5, %v1033_v19 }
0x22cb   :  { %v1041_v23 = vmul.f32 %v1038_v22, %v994_v60 }
0x2328   :  { %v1044_v20 = vpop.permute.xlu0 %1043 }
0x2329   :  { %v1046_v21 = vmul.f32 %v1044_v20, %v1038_v22 }
0x232b   :  { %1048 = vrot.lane.b32.xlu1 %v1046_v21, %s1294_s3 }
0x2330   :  { %v1072_v29 = vpop.permute.xlu0 %1071 }
0x2333   :  { %1075 = vrot.lane.b32.xlu1 %v1470_v35, %s1293_s2 }
0x2338   :  { %v1060_v35 = vpop.permute.xlu0 %1059 }
0x233b   :  { %1063 = vrot.lane.b32.xlu1 %v1430_v48, %s1293_s2 }
0x239d   :  { %v1049_v24 = vpop.permute.xlu1 %1048 }
0x239e   :  { %v1051_v25 = vadd.f32 %v1049_v24, %v1041_v23 }
0x23a0   :  { %1290 = vtanh.f32 %v1051_v25 }
0x23a5   :  { %v1076_v28 = vpop.permute.xlu1 %1075 }
0x23a6   :  { %v1291_v26 = vpop.eup %1290  ;;  %v1087_v31 = vsel %vm78_vm5, %v1072_v29, %v1076_v28 }
0x23a7   :  { %1054 = vrot.lane.b32.xlu2 %v1291_v26, %s1293_s2  ;;  %v1088_v48 = vsel %vm1083_vm6, %v1087_v31, %v1080_v27 }
0x23ad   :  { %v1064_v33 = vpop.permute.xlu1 %1063 }
0x23ae   :  { %v1082_v36 = vsel %vm78_vm5, %v1060_v35, %v1064_v33 }
0x23af   :  { %1067 = vrot.lane.b32.xlu2 %v1440_v14, %s1295_s5 }
0x2401   :  { %v1055_v30 = vpop.permute.xlu2 %1054 }
0x2402   :  { %v1057_v32 = vmul.f32 %v1055_v30, %v1038_v22 }
0x2404   :  { %v1089_v34 = vsel %vm1085_vm7, %v1088_v48, %v1057_v32 }
0x2405   :  { %v1092_v38 = vrot.slane %v1089_v34, 6 }
0x2409   :  { %v1068_v37 = vpop.permute.xlu2 %1067 }
0x240a   :  { %v1084_v39 = vsel %vm1083_vm6, %v1082_v36, %v1068_v37 }
0x240b   :  { %v1086_v14 = vsel %vm1085_vm7, %v1084_v39, %v1450_v41 }
0x240c   :  { %v1094_v40 = vsel %vm1093_vm8, %v1086_v14, %v1092_v38 }
0x240d   :  { %1096 = vst [vmem:[%s1509_s6] sm:$0xf] %v1094_v40 }

</bundles_post_ra>
